<compile_context>
chip_gen: v7x
topology: tpu7x:2x2x1
jax: 0.10.0
libtpu: 0.0.40
codegen_flags: <defaults>
</compile_context>

<pallas_src>
import numpy as np
import jax
import jax.numpy as jnp
from jax import lax
from jax.experimental import pallas as pl
from jax.experimental.pallas import tpu as pltpu

# Problem sizes (fixed by nn.Conv2d(64, 32, kernel_size=3, padding=1)).
B = 2
C_IN = 64
H = W = 8                      # input spatial -> 4x4 after pool1 -> 2x2 after pool2
C1 = 32
C2 = 32
H2, W2 = H // 2, W // 2        # 4, 4
H3, W3 = H2 // 2, W2 // 2      # 2, 2
INPUT_SIZE = C2 * H3 * W3      # 128  (fc1 in_features)
HIDDEN = 8                     # fc1 out_features
BN_EPS = 1e-5

N1 = B * H * W                 # 128 packed lane columns, used end-to-end
NP = H3 * W3 * B               # 8 final pooled columns (batch-minor: q = s*B + b)


# ----------------------------- kernel -----------------------------------------

def relation_network_kernel(x_ref, w1_ref, w2_ref, fc1w_ref,
                            mask1_ref, mask2_ref, sel2_ref,
                            cb_ref, fcp_ref, out_ref):
    bf = jnp.bfloat16
    f32 = jnp.float32
    cb = cb_ref[...]                                  # (32, 2) f32: [b1', b2']
    fcp = fcp_ref[...]                                # (8, 3) f32: [fc1_b, fc2_w, fc2_b]

    def conv3x3(inp, w_ref, mask_ref, c_out, scale):
        """inp: (Cin, 128) f32.  9 accumulated bf16 matmuls; tap offsets are
        scale*(dy*W+dx) lane positions (scale=2 on the stride-2 pooled grid)."""
        acc = jnp.zeros((c_out, N1), f32)
        for k in range(9):
            dy, dx = k // 3 - 1, k % 3 - 1
            sft = scale * (dy * W + dx)
            if sft == 0:
                tap = inp                              # center tap: always valid
            else:
                # roll left by `sft` (positive modular shift), zero the columns
                # whose tap would cross a row / image / batch boundary.
                tap = pltpu.roll(inp, (-sft) % N1, axis=1) * mask_ref[k:k + 1, :]
            acc = acc + jnp.dot(w_ref[k * c_out:(k + 1) * c_out, :],
                                tap.astype(bf),
                                preferred_element_type=f32)
        return acc

    # ---- layer1: conv1 (+folded BN) + ReLU, then 2x2 max (no compaction) ----
    y1 = jnp.maximum(conv3x3(x_ref[...], w1_ref, mask1_ref, C1, 1)
                     + cb[:, 0:1], 0.0)                # (32, 128) f32
    m = jnp.maximum(y1, pltpu.roll(y1, N1 - 1, axis=1))        # max with (h, w+1)
    p1 = jnp.maximum(m, pltpu.roll(m, N1 - W, axis=1))         # max with (h+1, *)
    # valid pool1 results live at columns with h, w even; others are ignored.

    # ---- layer2: conv2 on the stride-2 pooled grid + ReLU, then 2x2 max -----
    y2 = jnp.maximum(conv3x3(p1, w2_ref, mask2_ref, C2, 2)
                     + cb[:, 1:2], 0.0)                # (32, 128) f32
    m = jnp.maximum(y2, pltpu.roll(y2, N1 - 2, axis=1))        # pooled (ph, pw+1)
    p2s = jnp.maximum(m, pltpu.roll(m, N1 - 2 * W, axis=1))    # pooled (ph+1, *)

    # ---- final compaction: exact 0/1 bf16 selection matmul -> (32, 8) -------
    # column q = s*B + b  with s = p2h*2 + p2w (batch-minor).
    p2 = jnp.dot(p2s.astype(bf), sel2_ref[...],
                 preferred_element_type=f32).astype(bf)        # (32, 8)

    # ---- fc1 + ReLU: 4 accumulated (8,32)x(32,2) matmuls ---------------------
    hidden = jnp.zeros((HIDDEN, B), f32)
    for s in range(H3 * W3):
        hidden = hidden + jnp.dot(fc1w_ref[s * HIDDEN:(s + 1) * HIDDEN, :],
                                  p2[:, s * B:(s + 1) * B],
                                  preferred_element_type=f32)
    hidden = jnp.maximum(hidden + fcp[:, 0:1], 0.0)            # (8, 2)

    # ---- fc2 + sigmoid (EUP exp + approx reciprocal) -------------------------
    logit = jnp.sum(fcp[:, 1:2] * hidden, axis=0, keepdims=True) + fcp[0:1, 2:3]
    out_ref[...] = pl.reciprocal(1.0 + jnp.exp(-logit), approx=True)   # (1, 2)


# ----------------------- one-time parameter preparation ------------------------

def _conv_slab(w, conv_b, gamma, beta, mean, var):
    """Fold BN into conv; lay weights out as (9*Cout, Cin), rows k*Cout + o with
    k = (dy+1)*3 + (dx+1), so the kernel takes static sublane slices per tap."""
    scale = gamma / jnp.sqrt(var + BN_EPS)
    w_f = w * scale[:, None, None, None]                       # (Cout, Cin, 3, 3)
    b_f = beta - mean * scale + scale * conv_b                  # (Cout,)
    c_out, c_in = w.shape[0], w.shape[1]
    w_cat = jnp.transpose(w_f, (2, 3, 0, 1)).reshape(9 * c_out, c_in)
    return w_cat.astype(jnp.bfloat16), b_f.astype(jnp.float32)


def _conv_masks():
    """(9, 128) f32 0/1 masks for conv1 (original grid) and conv2 (stride-2
    pooled grid embedded in the same 128-column layout)."""
    m1 = np.zeros((9, N1), np.float32)
    m2 = np.zeros((9, N1), np.float32)
    for k in range(9):
        dy, dx = k // 3 - 1, k % 3 - 1
        for j in range(N1):
            s = j % (H * W)
            h, w = s // W, s % W
            m1[k, j] = float(0 <= h + dy < H and 0 <= w + dx < W)
            ph, pw = h // 2, w // 2
            m2[k, j] = float(0 <= ph + dy < H2 and 0 <= pw + dx < W2)
    return m1, m2


def _final_select():
    """(128, 8) 0/1 selector: pooled column q = s*B + b with s = p2h*2 + p2w;
    source column j = b*64 + (4*p2h)*8 + 4*p2w (window origin on the full grid)."""
    sel = np.zeros((N1, NP), np.float32)
    for q in range(NP):
        s, b = q // B, q % B
        p2h, p2w = s // W3, s % W3
        sel[b * (H * W) + (4 * p2h) * W + 4 * p2w, q] = 1.0
    return sel


def prepare_params(p):
    """One-time prep (outside the per-call jit): BN folding, weight re-layout,
    constant masks / selector.  Returns device-ready arrays."""
    w1_cat, b1 = _conv_slab(p['conv1_w'], p['conv1_b'], p['bn1_gamma'],
                            p['bn1_beta'], p['bn1_mean'], p['bn1_var'])
    w2_cat, b2 = _conv_slab(p['conv2_w'], p['conv2_b'], p['bn2_gamma'],
                            p['bn2_beta'], p['bn2_mean'], p['bn2_var'])
    # fc1 rearranged to (H3*W3*HIDDEN, C2): row s*HIDDEN + h, col c, where the
    # PyTorch flatten index is c*(H3*W3) + s.
    fc1w = (p['fc1_w'].reshape(HIDDEN, C2, H3 * W3).transpose(2, 0, 1)
            .reshape(H3 * W3 * HIDDEN, C2).astype(jnp.bfloat16))
    cb = jnp.stack([b1, b2], axis=1).astype(jnp.float32)        # (32, 2)
    fcp = jnp.stack([
        p['fc1_b'].astype(jnp.float32),
        p['fc2_w'].reshape(HIDDEN).astype(jnp.float32),
        jnp.zeros((HIDDEN,), jnp.float32).at[0].set(p['fc2_b'][0]),
    ], axis=1)                                                  # (8, 3)
    m1, m2 = _conv_masks()
    return dict(
        w1=w1_cat, w2=w2_cat, fc1w=fc1w, cb=cb, fcp=fcp,
        mask1=jnp.asarray(m1), mask2=jnp.asarray(m2),
        sel2=jnp.asarray(_final_select(), dtype=jnp.bfloat16),
    )


# ----------------------------- forward wrapper ---------------------------------

@jax.jit
def relation_network_forward(x_nchw, prep):
    # Pack batch into the lane axis: (C_in, B*H*W), column j = b*64 + h*8 + w.
    x_cm = (x_nchw.reshape(B, C_IN, H * W)
            .transpose(1, 0, 2).reshape(C_IN, B * H * W).astype(jnp.float32))
    out = pl.pallas_call(
        relation_network_kernel,
        out_shape=jax.ShapeDtypeStruct((1, B), jnp.float32),
        in_specs=[pl.BlockSpec(memory_space=pltpu.MemorySpace.VMEM)] * 9,
        out_specs=pl.BlockSpec(memory_space=pltpu.MemorySpace.VMEM),
    )(x_cm, prep['w1'], prep['w2'], prep['fc1w'],
      prep['mask1'], prep['mask2'], prep['sel2'], prep['cb'], prep['fcp'])
    return out.T                                                # (B, 1)


# ----------------------- pure-JAX reference (for checking) ---------------------

def reference_forward(x, p):
    def conv_bn_relu(x, w, b, gamma, beta, mean, var):
        y = lax.conv_general_dilated(x, w, (1, 1), ((1, 1), (1, 1)),
                                     dimension_numbers=('NCHW', 'OIHW', 'NCHW'))
        y = y + b.reshape(1, -1, 1, 1)
        scale = gamma / jnp.sqrt(var + BN_EPS)
        y = y * scale.reshape(1, -1, 1, 1) + (beta - mean * scale).reshape(1, -1, 1, 1)
        return jnp.maximum(y, 0.0)

    def maxpool2(x):
        return lax.reduce_window(x, -jnp.inf, lax.max,
                                 (1, 1, 2, 2), (1, 1, 2, 2), 'VALID')

    y = maxpool2(conv_bn_relu(x, p['conv1_w'], p['conv1_b'], p['bn1_gamma'],
                              p['bn1_beta'], p['bn1_mean'], p['bn1_var']))
    y = maxpool2(conv_bn_relu(y, p['conv2_w'], p['conv2_b'], p['bn2_gamma'],
                              p['bn2_beta'], p['bn2_mean'], p['bn2_var']))
    flat = y.reshape(B, -1)
    h = jnp.maximum(flat @ p['fc1_w'].T + p['fc1_b'], 0.0)
    return jax.nn.sigmoid(h @ p['fc2_w'].T + p['fc2_b'])


# --------------------------------- main -----------------------------------------

if __name__ == "__main__":
    f32 = jnp.float32
    key = jax.random.PRNGKey(0)
    ks = jax.random.split(key, 20)
    params = dict(
        conv1_w=0.05 * jax.random.normal(ks[0], (C1, C_IN, 3, 3), f32),
        conv1_b=0.05 * jax.random.normal(ks[1], (C1,), f32),
        bn1_gamma=1.0 + 0.1 * jax.random.normal(ks[2], (C1,), f32),
        bn1_beta=0.1 * jax.random.normal(ks[3], (C1,), f32),
        bn1_mean=0.1 * jax.random.normal(ks[4], (C1,), f32),
        bn1_var=1.0 + 0.1 * jax.random.uniform(ks[5], (C1,), f32),
        conv2_w=0.08 * jax.random.normal(ks[6], (C2, C1, 3, 3), f32),
        conv2_b=0.05 * jax.random.normal(ks[7], (C2,), f32),
        bn2_gamma=1.0 + 0.1 * jax.random.normal(ks[8], (C2,), f32),
        bn2_beta=0.1 * jax.random.normal(ks[9], (C2,), f32),
        bn2_mean=0.1 * jax.random.normal(ks[10], (C2,), f32),
        bn2_var=1.0 + 0.1 * jax.random.uniform(ks[11], (C2,), f32),
        fc1_w=(1.0 / INPUT_SIZE ** 0.5) * jax.random.normal(
            ks[12], (HIDDEN, INPUT_SIZE), f32),
        fc1_b=0.1 * jax.random.normal(ks[13], (HIDDEN,), f32),
        fc2_w=(1.0 / HIDDEN ** 0.5) * jax.random.normal(ks[14], (1, HIDDEN), f32),
        fc2_b=0.1 * jax.random.normal(ks[15], (1,), f32),
    )
    x = jax.random.normal(ks[16], (B, C_IN, H, W), f32)   # NCHW, like PyTorch

    prep = prepare_params(params)                         # one-time, outside jit
    out = jax.block_until_ready(relation_network_forward(x, prep))
    ref = reference_forward(x, params)

    assert out.shape == (B, 1)
    max_diff = float(jnp.max(jnp.abs(out - ref)))
    if not bool(jnp.all(jnp.isfinite(out))) or max_diff > 3e-2:
        raise SystemExit(f"kernel/reference mismatch: max_abs_diff={max_diff}")
    print("KERNEL_OK")
</pallas_src>

<mosaic_0001>
module attributes {stable_mosaic.version = 11 : i64} {
  func.func @relation_network_kernel(%arg0: memref<64x128xf32, #tpu.memory_space<vmem>>, %arg1: memref<288x64xbf16, #tpu.memory_space<vmem>>, %arg2: memref<288x32xbf16, #tpu.memory_space<vmem>>, %arg3: memref<32x32xbf16, #tpu.memory_space<vmem>>, %arg4: memref<9x128xf32, #tpu.memory_space<vmem>>, %arg5: memref<9x128xf32, #tpu.memory_space<vmem>>, %arg6: memref<128x8xbf16, #tpu.memory_space<vmem>>, %arg7: memref<32x2xf32, #tpu.memory_space<vmem>>, %arg8: memref<8x3xf32, #tpu.memory_space<vmem>>, %arg9: memref<1x2xf32, #tpu.memory_space<vmem>>) attributes {dimension_semantics = [], scalar_prefetch = 0 : i64, scratch_operands = 0 : i64, tpu.core_type = #tpu.core_type<tc>} {
    %c0 = arith.constant 0 : index
    %c0_0 = arith.constant 0 : index
    %0 = vector.load %arg7[%c0, %c0_0] : memref<32x2xf32, #tpu.memory_space<vmem>>, vector<32x2xf32>
    %c0_1 = arith.constant 0 : index
    %c0_2 = arith.constant 0 : index
    %1 = vector.load %arg8[%c0_1, %c0_2] : memref<8x3xf32, #tpu.memory_space<vmem>>, vector<8x3xf32>
    %c0_3 = arith.constant 0 : index
    %c0_4 = arith.constant 0 : index
    %2 = vector.load %arg0[%c0_3, %c0_4] : memref<64x128xf32, #tpu.memory_space<vmem>>, vector<64x128xf32>
    %cst = arith.constant 0.000000e+00 : f32
    %3 = vector.broadcast %cst : f32 to vector<32x128xf32>
    %c9_i32 = arith.constant 9 : i32
    %4 = tpu.dynamic_rotate %2 by %c9_i32 dim 1 : vector<64x128xf32>, i32 -> vector<64x128xf32>
    %c0_5 = arith.constant 0 : index
    %c0_6 = arith.constant 0 : index
    %5 = vector.load %arg4[%c0_5, %c0_6] : memref<9x128xf32, #tpu.memory_space<vmem>>, vector<1x128xf32>
    %6 = vector.broadcast %5 : vector<1x128xf32> to vector<64x128xf32>
    %7 = arith.mulf %4, %6 : vector<64x128xf32>
    %c0_7 = arith.constant 0 : index
    %c0_8 = arith.constant 0 : index
    %8 = vector.load %arg1[%c0_7, %c0_8] : memref<288x64xbf16, #tpu.memory_space<vmem>>, vector<32x64xbf16>
    %9 = arith.truncf %7 : vector<64x128xf32> to vector<64x128xbf16>
    %cst_9 = arith.constant dense<0.000000e+00> : vector<32x128xf32>
    %10 = tpu.matmul %8, %9, %cst_9 {dimension_numbers = #tpu.dot_dimension_numbers<[1], [0], [0], [1], [0, 0, 1, 1], [], []>} : vector<32x64xbf16>, vector<64x128xbf16>, vector<32x128xf32> -> vector<32x128xf32>
    %11 = arith.addf %3, %10 : vector<32x128xf32>
    %c8_i32 = arith.constant 8 : i32
    %12 = tpu.dynamic_rotate %2 by %c8_i32 dim 1 : vector<64x128xf32>, i32 -> vector<64x128xf32>
    %c1 = arith.constant 1 : index
    %c0_10 = arith.constant 0 : index
    %13 = vector.load %arg4[%c1, %c0_10] : memref<9x128xf32, #tpu.memory_space<vmem>>, vector<1x128xf32>
    %14 = vector.broadcast %13 : vector<1x128xf32> to vector<64x128xf32>
    %15 = arith.mulf %12, %14 : vector<64x128xf32>
    %c32 = arith.constant 32 : index
    %c0_11 = arith.constant 0 : index
    %16 = vector.load %arg1[%c32, %c0_11] : memref<288x64xbf16, #tpu.memory_space<vmem>>, vector<32x64xbf16>
    %17 = arith.truncf %15 : vector<64x128xf32> to vector<64x128xbf16>
    %cst_12 = arith.constant dense<0.000000e+00> : vector<32x128xf32>
    %18 = tpu.matmul %16, %17, %cst_12 {dimension_numbers = #tpu.dot_dimension_numbers<[1], [0], [0], [1], [0, 0, 1, 1], [], []>} : vector<32x64xbf16>, vector<64x128xbf16>, vector<32x128xf32> -> vector<32x128xf32>
    %19 = arith.addf %11, %18 : vector<32x128xf32>
    %c7_i32 = arith.constant 7 : i32
    %20 = tpu.dynamic_rotate %2 by %c7_i32 dim 1 : vector<64x128xf32>, i32 -> vector<64x128xf32>
    %c2 = arith.constant 2 : index
    %c0_13 = arith.constant 0 : index
    %21 = vector.load %arg4[%c2, %c0_13] : memref<9x128xf32, #tpu.memory_space<vmem>>, vector<1x128xf32>
    %22 = vector.broadcast %21 : vector<1x128xf32> to vector<64x128xf32>
    %23 = arith.mulf %20, %22 : vector<64x128xf32>
    %c64 = arith.constant 64 : index
    %c0_14 = arith.constant 0 : index
    %24 = vector.load %arg1[%c64, %c0_14] : memref<288x64xbf16, #tpu.memory_space<vmem>>, vector<32x64xbf16>
    %25 = arith.truncf %23 : vector<64x128xf32> to vector<64x128xbf16>
    %cst_15 = arith.constant dense<0.000000e+00> : vector<32x128xf32>
    %26 = tpu.matmul %24, %25, %cst_15 {dimension_numbers = #tpu.dot_dimension_numbers<[1], [0], [0], [1], [0, 0, 1, 1], [], []>} : vector<32x64xbf16>, vector<64x128xbf16>, vector<32x128xf32> -> vector<32x128xf32>
    %27 = arith.addf %19, %26 : vector<32x128xf32>
    %c1_i32 = arith.constant 1 : i32
    %28 = tpu.dynamic_rotate %2 by %c1_i32 dim 1 : vector<64x128xf32>, i32 -> vector<64x128xf32>
    %c3 = arith.constant 3 : index
    %c0_16 = arith.constant 0 : index
    %29 = vector.load %arg4[%c3, %c0_16] : memref<9x128xf32, #tpu.memory_space<vmem>>, vector<1x128xf32>
    %30 = vector.broadcast %29 : vector<1x128xf32> to vector<64x128xf32>
    %31 = arith.mulf %28, %30 : vector<64x128xf32>
    %c96 = arith.constant 96 : index
    %c0_17 = arith.constant 0 : index
    %32 = vector.load %arg1[%c96, %c0_17] : memref<288x64xbf16, #tpu.memory_space<vmem>>, vector<32x64xbf16>
    %33 = arith.truncf %31 : vector<64x128xf32> to vector<64x128xbf16>
    %cst_18 = arith.constant dense<0.000000e+00> : vector<32x128xf32>
    %34 = tpu.matmul %32, %33, %cst_18 {dimension_numbers = #tpu.dot_dimension_numbers<[1], [0], [0], [1], [0, 0, 1, 1], [], []>} : vector<32x64xbf16>, vector<64x128xbf16>, vector<32x128xf32> -> vector<32x128xf32>
    %35 = arith.addf %27, %34 : vector<32x128xf32>
    %c128 = arith.constant 128 : index
    %c0_19 = arith.constant 0 : index
    %36 = vector.load %arg1[%c128, %c0_19] : memref<288x64xbf16, #tpu.memory_space<vmem>>, vector<32x64xbf16>
    %37 = arith.truncf %2 : vector<64x128xf32> to vector<64x128xbf16>
    %cst_20 = arith.constant dense<0.000000e+00> : vector<32x128xf32>
    %38 = tpu.matmul %36, %37, %cst_20 {dimension_numbers = #tpu.dot_dimension_numbers<[1], [0], [0], [1], [0, 0, 1, 1], [], []>} : vector<32x64xbf16>, vector<64x128xbf16>, vector<32x128xf32> -> vector<32x128xf32>
    %39 = arith.addf %35, %38 : vector<32x128xf32>
    %c127_i32 = arith.constant 127 : i32
    %40 = tpu.dynamic_rotate %2 by %c127_i32 dim 1 : vector<64x128xf32>, i32 -> vector<64x128xf32>
    %c5 = arith.constant 5 : index
    %c0_21 = arith.constant 0 : index
    %41 = vector.load %arg4[%c5, %c0_21] : memref<9x128xf32, #tpu.memory_space<vmem>>, vector<1x128xf32>
    %42 = vector.broadcast %41 : vector<1x128xf32> to vector<64x128xf32>
    %43 = arith.mulf %40, %42 : vector<64x128xf32>
    %c160 = arith.constant 160 : index
    %c0_22 = arith.constant 0 : index
    %44 = vector.load %arg1[%c160, %c0_22] : memref<288x64xbf16, #tpu.memory_space<vmem>>, vector<32x64xbf16>
    %45 = arith.truncf %43 : vector<64x128xf32> to vector<64x128xbf16>
    %cst_23 = arith.constant dense<0.000000e+00> : vector<32x128xf32>
    %46 = tpu.matmul %44, %45, %cst_23 {dimension_numbers = #tpu.dot_dimension_numbers<[1], [0], [0], [1], [0, 0, 1, 1], [], []>} : vector<32x64xbf16>, vector<64x128xbf16>, vector<32x128xf32> -> vector<32x128xf32>
    %47 = arith.addf %39, %46 : vector<32x128xf32>
    %c121_i32 = arith.constant 121 : i32
    %48 = tpu.dynamic_rotate %2 by %c121_i32 dim 1 : vector<64x128xf32>, i32 -> vector<64x128xf32>
    %c6 = arith.constant 6 : index
    %c0_24 = arith.constant 0 : index
    %49 = vector.load %arg4[%c6, %c0_24] : memref<9x128xf32, #tpu.memory_space<vmem>>, vector<1x128xf32>
    %50 = vector.broadcast %49 : vector<1x128xf32> to vector<64x128xf32>
    %51 = arith.mulf %48, %50 : vector<64x128xf32>
    %c192 = arith.constant 192 : index
    %c0_25 = arith.constant 0 : index
    %52 = vector.load %arg1[%c192, %c0_25] : memref<288x64xbf16, #tpu.memory_space<vmem>>, vector<32x64xbf16>
    %53 = arith.truncf %51 : vector<64x128xf32> to vector<64x128xbf16>
    %cst_26 = arith.constant dense<0.000000e+00> : vector<32x128xf32>
    %54 = tpu.matmul %52, %53, %cst_26 {dimension_numbers = #tpu.dot_dimension_numbers<[1], [0], [0], [1], [0, 0, 1, 1], [], []>} : vector<32x64xbf16>, vector<64x128xbf16>, vector<32x128xf32> -> vector<32x128xf32>
    %55 = arith.addf %47, %54 : vector<32x128xf32>
    %c120_i32 = arith.constant 120 : i32
    %56 = tpu.dynamic_rotate %2 by %c120_i32 dim 1 : vector<64x128xf32>, i32 -> vector<64x128xf32>
    %c7 = arith.constant 7 : index
    %c0_27 = arith.constant 0 : index
    %57 = vector.load %arg4[%c7, %c0_27] : memref<9x128xf32, #tpu.memory_space<vmem>>, vector<1x128xf32>
    %58 = vector.broadcast %57 : vector<1x128xf32> to vector<64x128xf32>
    %59 = arith.mulf %56, %58 : vector<64x128xf32>
    %c224 = arith.constant 224 : index
    %c0_28 = arith.constant 0 : index
    %60 = vector.load %arg1[%c224, %c0_28] : memref<288x64xbf16, #tpu.memory_space<vmem>>, vector<32x64xbf16>
    %61 = arith.truncf %59 : vector<64x128xf32> to vector<64x128xbf16>
    %cst_29 = arith.constant dense<0.000000e+00> : vector<32x128xf32>
    %62 = tpu.matmul %60, %61, %cst_29 {dimension_numbers = #tpu.dot_dimension_numbers<[1], [0], [0], [1], [0, 0, 1, 1], [], []>} : vector<32x64xbf16>, vector<64x128xbf16>, vector<32x128xf32> -> vector<32x128xf32>
    %63 = arith.addf %55, %62 : vector<32x128xf32>
    %c119_i32 = arith.constant 119 : i32
    %64 = tpu.dynamic_rotate %2 by %c119_i32 dim 1 : vector<64x128xf32>, i32 -> vector<64x128xf32>
    %c8 = arith.constant 8 : index
    %c0_30 = arith.constant 0 : index
    %65 = vector.load %arg4[%c8, %c0_30] : memref<9x128xf32, #tpu.memory_space<vmem>>, vector<1x128xf32>
    %66 = vector.broadcast %65 : vector<1x128xf32> to vector<64x128xf32>
    %67 = arith.mulf %64, %66 : vector<64x128xf32>
    %c256 = arith.constant 256 : index
    %c0_31 = arith.constant 0 : index
    %68 = vector.load %arg1[%c256, %c0_31] : memref<288x64xbf16, #tpu.memory_space<vmem>>, vector<32x64xbf16>
    %69 = arith.truncf %67 : vector<64x128xf32> to vector<64x128xbf16>
    %cst_32 = arith.constant dense<0.000000e+00> : vector<32x128xf32>
    %70 = tpu.matmul %68, %69, %cst_32 {dimension_numbers = #tpu.dot_dimension_numbers<[1], [0], [0], [1], [0, 0, 1, 1], [], []>} : vector<32x64xbf16>, vector<64x128xbf16>, vector<32x128xf32> -> vector<32x128xf32>
    %71 = arith.addf %63, %70 : vector<32x128xf32>
    %72 = vector.extract_strided_slice %0 {offsets = [0, 0], sizes = [32, 1], strides = [1, 1]} : vector<32x2xf32> to vector<32x1xf32>
    %73 = vector.broadcast %72 : vector<32x1xf32> to vector<32x128xf32>
    %74 = arith.addf %71, %73 : vector<32x128xf32>
    %cst_33 = arith.constant 0.000000e+00 : f32
    %75 = vector.broadcast %cst_33 : f32 to vector<32x128xf32>
    %76 = arith.maximumf %74, %75 : vector<32x128xf32>
    %c127_i32_34 = arith.constant 127 : i32
    %77 = tpu.dynamic_rotate %76 by %c127_i32_34 dim 1 : vector<32x128xf32>, i32 -> vector<32x128xf32>
    %78 = arith.maximumf %76, %77 : vector<32x128xf32>
    %c120_i32_35 = arith.constant 120 : i32
    %79 = tpu.dynamic_rotate %78 by %c120_i32_35 dim 1 : vector<32x128xf32>, i32 -> vector<32x128xf32>
    %80 = arith.maximumf %78, %79 : vector<32x128xf32>
    %cst_36 = arith.constant 0.000000e+00 : f32
    %81 = vector.broadcast %cst_36 : f32 to vector<32x128xf32>
    %c18_i32 = arith.constant 18 : i32
    %82 = tpu.dynamic_rotate %80 by %c18_i32 dim 1 : vector<32x128xf32>, i32 -> vector<32x128xf32>
    %c0_37 = arith.constant 0 : index
    %c0_38 = arith.constant 0 : index
    %83 = vector.load %arg5[%c0_37, %c0_38] : memref<9x128xf32, #tpu.memory_space<vmem>>, vector<1x128xf32>
    %84 = vector.broadcast %83 : vector<1x128xf32> to vector<32x128xf32>
    %85 = arith.mulf %82, %84 : vector<32x128xf32>
    %c0_39 = arith.constant 0 : index
    %c0_40 = arith.constant 0 : index
    %86 = vector.load %arg2[%c0_39, %c0_40] : memref<288x32xbf16, #tpu.memory_space<vmem>>, vector<32x32xbf16>
    %87 = arith.truncf %85 : vector<32x128xf32> to vector<32x128xbf16>
    %cst_41 = arith.constant dense<0.000000e+00> : vector<32x128xf32>
    %88 = tpu.matmul %86, %87, %cst_41 {dimension_numbers = #tpu.dot_dimension_numbers<[1], [0], [0], [1], [0, 0, 1, 1], [], []>} : vector<32x32xbf16>, vector<32x128xbf16>, vector<32x128xf32> -> vector<32x128xf32>
    %89 = arith.addf %81, %88 : vector<32x128xf32>
    %c16_i32 = arith.constant 16 : i32
    %90 = tpu.dynamic_rotate %80 by %c16_i32 dim 1 : vector<32x128xf32>, i32 -> vector<32x128xf32>
    %c1_42 = arith.constant 1 : index
    %c0_43 = arith.constant 0 : index
    %91 = vector.load %arg5[%c1_42, %c0_43] : memref<9x128xf32, #tpu.memory_space<vmem>>, vector<1x128xf32>
    %92 = vector.broadcast %91 : vector<1x128xf32> to vector<32x128xf32>
    %93 = arith.mulf %90, %92 : vector<32x128xf32>
    %c32_44 = arith.constant 32 : index
    %c0_45 = arith.constant 0 : index
    %94 = vector.load %arg2[%c32_44, %c0_45] : memref<288x32xbf16, #tpu.memory_space<vmem>>, vector<32x32xbf16>
    %95 = arith.truncf %93 : vector<32x128xf32> to vector<32x128xbf16>
    %cst_46 = arith.constant dense<0.000000e+00> : vector<32x128xf32>
    %96 = tpu.matmul %94, %95, %cst_46 {dimension_numbers = #tpu.dot_dimension_numbers<[1], [0], [0], [1], [0, 0, 1, 1], [], []>} : vector<32x32xbf16>, vector<32x128xbf16>, vector<32x128xf32> -> vector<32x128xf32>
    %97 = arith.addf %89, %96 : vector<32x128xf32>
    %c14_i32 = arith.constant 14 : i32
    %98 = tpu.dynamic_rotate %80 by %c14_i32 dim 1 : vector<32x128xf32>, i32 -> vector<32x128xf32>
    %c2_47 = arith.constant 2 : index
    %c0_48 = arith.constant 0 : index
    %99 = vector.load %arg5[%c2_47, %c0_48] : memref<9x128xf32, #tpu.memory_space<vmem>>, vector<1x128xf32>
    %100 = vector.broadcast %99 : vector<1x128xf32> to vector<32x128xf32>
    %101 = arith.mulf %98, %100 : vector<32x128xf32>
    %c64_49 = arith.constant 64 : index
    %c0_50 = arith.constant 0 : index
    %102 = vector.load %arg2[%c64_49, %c0_50] : memref<288x32xbf16, #tpu.memory_space<vmem>>, vector<32x32xbf16>
    %103 = arith.truncf %101 : vector<32x128xf32> to vector<32x128xbf16>
    %cst_51 = arith.constant dense<0.000000e+00> : vector<32x128xf32>
    %104 = tpu.matmul %102, %103, %cst_51 {dimension_numbers = #tpu.dot_dimension_numbers<[1], [0], [0], [1], [0, 0, 1, 1], [], []>} : vector<32x32xbf16>, vector<32x128xbf16>, vector<32x128xf32> -> vector<32x128xf32>
    %105 = arith.addf %97, %104 : vector<32x128xf32>
    %c2_i32 = arith.constant 2 : i32
    %106 = tpu.dynamic_rotate %80 by %c2_i32 dim 1 : vector<32x128xf32>, i32 -> vector<32x128xf32>
    %c3_52 = arith.constant 3 : index
    %c0_53 = arith.constant 0 : index
    %107 = vector.load %arg5[%c3_52, %c0_53] : memref<9x128xf32, #tpu.memory_space<vmem>>, vector<1x128xf32>
    %108 = vector.broadcast %107 : vector<1x128xf32> to vector<32x128xf32>
    %109 = arith.mulf %106, %108 : vector<32x128xf32>
    %c96_54 = arith.constant 96 : index
    %c0_55 = arith.constant 0 : index
    %110 = vector.load %arg2[%c96_54, %c0_55] : memref<288x32xbf16, #tpu.memory_space<vmem>>, vector<32x32xbf16>
    %111 = arith.truncf %109 : vector<32x128xf32> to vector<32x128xbf16>
    %cst_56 = arith.constant dense<0.000000e+00> : vector<32x128xf32>
    %112 = tpu.matmul %110, %111, %cst_56 {dimension_numbers = #tpu.dot_dimension_numbers<[1], [0], [0], [1], [0, 0, 1, 1], [], []>} : vector<32x32xbf16>, vector<32x128xbf16>, vector<32x128xf32> -> vector<32x128xf32>
    %113 = arith.addf %105, %112 : vector<32x128xf32>
    %c128_57 = arith.constant 128 : index
    %c0_58 = arith.constant 0 : index
    %114 = vector.load %arg2[%c128_57, %c0_58] : memref<288x32xbf16, #tpu.memory_space<vmem>>, vector<32x32xbf16>
    %115 = arith.truncf %80 : vector<32x128xf32> to vector<32x128xbf16>
    %cst_59 = arith.constant dense<0.000000e+00> : vector<32x128xf32>
    %116 = tpu.matmul %114, %115, %cst_59 {dimension_numbers = #tpu.dot_dimension_numbers<[1], [0], [0], [1], [0, 0, 1, 1], [], []>} : vector<32x32xbf16>, vector<32x128xbf16>, vector<32x128xf32> -> vector<32x128xf32>
    %117 = arith.addf %113, %116 : vector<32x128xf32>
    %c126_i32 = arith.constant 126 : i32
    %118 = tpu.dynamic_rotate %80 by %c126_i32 dim 1 : vector<32x128xf32>, i32 -> vector<32x128xf32>
    %c5_60 = arith.constant 5 : index
    %c0_61 = arith.constant 0 : index
    %119 = vector.load %arg5[%c5_60, %c0_61] : memref<9x128xf32, #tpu.memory_space<vmem>>, vector<1x128xf32>
    %120 = vector.broadcast %119 : vector<1x128xf32> to vector<32x128xf32>
    %121 = arith.mulf %118, %120 : vector<32x128xf32>
    %c160_62 = arith.constant 160 : index
    %c0_63 = arith.constant 0 : index
    %122 = vector.load %arg2[%c160_62, %c0_63] : memref<288x32xbf16, #tpu.memory_space<vmem>>, vector<32x32xbf16>
    %123 = arith.truncf %121 : vector<32x128xf32> to vector<32x128xbf16>
    %cst_64 = arith.constant dense<0.000000e+00> : vector<32x128xf32>
    %124 = tpu.matmul %122, %123, %cst_64 {dimension_numbers = #tpu.dot_dimension_numbers<[1], [0], [0], [1], [0, 0, 1, 1], [], []>} : vector<32x32xbf16>, vector<32x128xbf16>, vector<32x128xf32> -> vector<32x128xf32>
    %125 = arith.addf %117, %124 : vector<32x128xf32>
    %c114_i32 = arith.constant 114 : i32
    %126 = tpu.dynamic_rotate %80 by %c114_i32 dim 1 : vector<32x128xf32>, i32 -> vector<32x128xf32>
    %c6_65 = arith.constant 6 : index
    %c0_66 = arith.constant 0 : index
    %127 = vector.load %arg5[%c6_65, %c0_66] : memref<9x128xf32, #tpu.memory_space<vmem>>, vector<1x128xf32>
    %128 = vector.broadcast %127 : vector<1x128xf32> to vector<32x128xf32>
    %129 = arith.mulf %126, %128 : vector<32x128xf32>
    %c192_67 = arith.constant 192 : index
    %c0_68 = arith.constant 0 : index
    %130 = vector.load %arg2[%c192_67, %c0_68] : memref<288x32xbf16, #tpu.memory_space<vmem>>, vector<32x32xbf16>
    %131 = arith.truncf %129 : vector<32x128xf32> to vector<32x128xbf16>
    %cst_69 = arith.constant dense<0.000000e+00> : vector<32x128xf32>
    %132 = tpu.matmul %130, %131, %cst_69 {dimension_numbers = #tpu.dot_dimension_numbers<[1], [0], [0], [1], [0, 0, 1, 1], [], []>} : vector<32x32xbf16>, vector<32x128xbf16>, vector<32x128xf32> -> vector<32x128xf32>
    %133 = arith.addf %125, %132 : vector<32x128xf32>
    %c112_i32 = arith.constant 112 : i32
    %134 = tpu.dynamic_rotate %80 by %c112_i32 dim 1 : vector<32x128xf32>, i32 -> vector<32x128xf32>
    %c7_70 = arith.constant 7 : index
    %c0_71 = arith.constant 0 : index
    %135 = vector.load %arg5[%c7_70, %c0_71] : memref<9x128xf32, #tpu.memory_space<vmem>>, vector<1x128xf32>
    %136 = vector.broadcast %135 : vector<1x128xf32> to vector<32x128xf32>
    %137 = arith.mulf %134, %136 : vector<32x128xf32>
    %c224_72 = arith.constant 224 : index
    %c0_73 = arith.constant 0 : index
    %138 = vector.load %arg2[%c224_72, %c0_73] : memref<288x32xbf16, #tpu.memory_space<vmem>>, vector<32x32xbf16>
    %139 = arith.truncf %137 : vector<32x128xf32> to vector<32x128xbf16>
    %cst_74 = arith.constant dense<0.000000e+00> : vector<32x128xf32>
    %140 = tpu.matmul %138, %139, %cst_74 {dimension_numbers = #tpu.dot_dimension_numbers<[1], [0], [0], [1], [0, 0, 1, 1], [], []>} : vector<32x32xbf16>, vector<32x128xbf16>, vector<32x128xf32> -> vector<32x128xf32>
    %141 = arith.addf %133, %140 : vector<32x128xf32>
    %c110_i32 = arith.constant 110 : i32
    %142 = tpu.dynamic_rotate %80 by %c110_i32 dim 1 : vector<32x128xf32>, i32 -> vector<32x128xf32>
    %c8_75 = arith.constant 8 : index
    %c0_76 = arith.constant 0 : index
    %143 = vector.load %arg5[%c8_75, %c0_76] : memref<9x128xf32, #tpu.memory_space<vmem>>, vector<1x128xf32>
    %144 = vector.broadcast %143 : vector<1x128xf32> to vector<32x128xf32>
    %145 = arith.mulf %142, %144 : vector<32x128xf32>
    %c256_77 = arith.constant 256 : index
    %c0_78 = arith.constant 0 : index
    %146 = vector.load %arg2[%c256_77, %c0_78] : memref<288x32xbf16, #tpu.memory_space<vmem>>, vector<32x32xbf16>
    %147 = arith.truncf %145 : vector<32x128xf32> to vector<32x128xbf16>
    %cst_79 = arith.constant dense<0.000000e+00> : vector<32x128xf32>
    %148 = tpu.matmul %146, %147, %cst_79 {dimension_numbers = #tpu.dot_dimension_numbers<[1], [0], [0], [1], [0, 0, 1, 1], [], []>} : vector<32x32xbf16>, vector<32x128xbf16>, vector<32x128xf32> -> vector<32x128xf32>
    %149 = arith.addf %141, %148 : vector<32x128xf32>
    %150 = vector.extract_strided_slice %0 {offsets = [0, 1], sizes = [32, 1], strides = [1, 1]} : vector<32x2xf32> to vector<32x1xf32>
    %151 = vector.broadcast %150 : vector<32x1xf32> to vector<32x128xf32>
    %152 = arith.addf %149, %151 : vector<32x128xf32>
    %cst_80 = arith.constant 0.000000e+00 : f32
    %153 = vector.broadcast %cst_80 : f32 to vector<32x128xf32>
    %154 = arith.maximumf %152, %153 : vector<32x128xf32>
    %c126_i32_81 = arith.constant 126 : i32
    %155 = tpu.dynamic_rotate %154 by %c126_i32_81 dim 1 : vector<32x128xf32>, i32 -> vector<32x128xf32>
    %156 = arith.maximumf %154, %155 : vector<32x128xf32>
    %c112_i32_82 = arith.constant 112 : i32
    %157 = tpu.dynamic_rotate %156 by %c112_i32_82 dim 1 : vector<32x128xf32>, i32 -> vector<32x128xf32>
    %158 = arith.maximumf %156, %157 : vector<32x128xf32>
    %159 = arith.truncf %158 : vector<32x128xf32> to vector<32x128xbf16>
    %c0_83 = arith.constant 0 : index
    %c0_84 = arith.constant 0 : index
    %160 = vector.load %arg6[%c0_83, %c0_84] : memref<128x8xbf16, #tpu.memory_space<vmem>>, vector<128x8xbf16>
    %cst_85 = arith.constant dense<0.000000e+00> : vector<32x8xf32>
    %161 = tpu.matmul %159, %160, %cst_85 {dimension_numbers = #tpu.dot_dimension_numbers<[1], [0], [0], [1], [0, 0, 1, 1], [], []>} : vector<32x128xbf16>, vector<128x8xbf16>, vector<32x8xf32> -> vector<32x8xf32>
    %162 = arith.truncf %161 : vector<32x8xf32> to vector<32x8xbf16>
    %cst_86 = arith.constant 0.000000e+00 : f32
    %163 = vector.broadcast %cst_86 : f32 to vector<8x2xf32>
    %c0_87 = arith.constant 0 : index
    %c0_88 = arith.constant 0 : index
    %164 = vector.load %arg3[%c0_87, %c0_88] : memref<32x32xbf16, #tpu.memory_space<vmem>>, vector<8x32xbf16>
    %165 = vector.extract_strided_slice %162 {offsets = [0, 0], sizes = [32, 2], strides = [1, 1]} : vector<32x8xbf16> to vector<32x2xbf16>
    %cst_89 = arith.constant dense<0.000000e+00> : vector<8x2xf32>
    %166 = tpu.matmul %164, %165, %cst_89 {dimension_numbers = #tpu.dot_dimension_numbers<[1], [0], [0], [1], [0, 0, 1, 1], [], []>} : vector<8x32xbf16>, vector<32x2xbf16>, vector<8x2xf32> -> vector<8x2xf32>
    %167 = arith.addf %163, %166 : vector<8x2xf32>
    %c8_90 = arith.constant 8 : index
    %c0_91 = arith.constant 0 : index
    %168 = vector.load %arg3[%c8_90, %c0_91] : memref<32x32xbf16, #tpu.memory_space<vmem>>, vector<8x32xbf16>
    %169 = vector.extract_strided_slice %162 {offsets = [0, 2], sizes = [32, 2], strides = [1, 1]} : vector<32x8xbf16> to vector<32x2xbf16>
    %cst_92 = arith.constant dense<0.000000e+00> : vector<8x2xf32>
    %170 = tpu.matmul %168, %169, %cst_92 {dimension_numbers = #tpu.dot_dimension_numbers<[1], [0], [0], [1], [0, 0, 1, 1], [], []>} : vector<8x32xbf16>, vector<32x2xbf16>, vector<8x2xf32> -> vector<8x2xf32>
    %171 = arith.addf %167, %170 : vector<8x2xf32>
    %c16 = arith.constant 16 : index
    %c0_93 = arith.constant 0 : index
    %172 = vector.load %arg3[%c16, %c0_93] : memref<32x32xbf16, #tpu.memory_space<vmem>>, vector<8x32xbf16>
    %173 = vector.extract_strided_slice %162 {offsets = [0, 4], sizes = [32, 2], strides = [1, 1]} : vector<32x8xbf16> to vector<32x2xbf16>
    %cst_94 = arith.constant dense<0.000000e+00> : vector<8x2xf32>
    %174 = tpu.matmul %172, %173, %cst_94 {dimension_numbers = #tpu.dot_dimension_numbers<[1], [0], [0], [1], [0, 0, 1, 1], [], []>} : vector<8x32xbf16>, vector<32x2xbf16>, vector<8x2xf32> -> vector<8x2xf32>
    %175 = arith.addf %171, %174 : vector<8x2xf32>
    %c24 = arith.constant 24 : index
    %c0_95 = arith.constant 0 : index
    %176 = vector.load %arg3[%c24, %c0_95] : memref<32x32xbf16, #tpu.memory_space<vmem>>, vector<8x32xbf16>
    %177 = vector.extract_strided_slice %162 {offsets = [0, 6], sizes = [32, 2], strides = [1, 1]} : vector<32x8xbf16> to vector<32x2xbf16>
    %cst_96 = arith.constant dense<0.000000e+00> : vector<8x2xf32>
    %178 = tpu.matmul %176, %177, %cst_96 {dimension_numbers = #tpu.dot_dimension_numbers<[1], [0], [0], [1], [0, 0, 1, 1], [], []>} : vector<8x32xbf16>, vector<32x2xbf16>, vector<8x2xf32> -> vector<8x2xf32>
    %179 = arith.addf %175, %178 : vector<8x2xf32>
    %180 = vector.extract_strided_slice %1 {offsets = [0, 0], sizes = [8, 1], strides = [1, 1]} : vector<8x3xf32> to vector<8x1xf32>
    %181 = vector.broadcast %180 : vector<8x1xf32> to vector<8x2xf32>
    %182 = arith.addf %179, %181 : vector<8x2xf32>
    %cst_97 = arith.constant 0.000000e+00 : f32
    %183 = vector.broadcast %cst_97 : f32 to vector<8x2xf32>
    %184 = arith.maximumf %182, %183 : vector<8x2xf32>
    %185 = vector.extract_strided_slice %1 {offsets = [0, 1], sizes = [8, 1], strides = [1, 1]} : vector<8x3xf32> to vector<8x1xf32>
    %186 = vector.broadcast %185 : vector<8x1xf32> to vector<8x2xf32>
    %187 = arith.mulf %186, %184 : vector<8x2xf32>
    %cst_98 = arith.constant dense<0.000000e+00> : vector<2xf32>
    %188 = vector.multi_reduction <add>, %187, %cst_98 [0] : vector<8x2xf32> to vector<2xf32>
    %189 = vector.shape_cast %188 : vector<2xf32> to vector<1x2xf32>
    %190 = vector.extract_strided_slice %1 {offsets = [0, 2], sizes = [1, 1], strides = [1, 1]} : vector<8x3xf32> to vector<1x1xf32>
    %191 = vector.broadcast %190 : vector<1x1xf32> to vector<1x2xf32>
    %192 = arith.addf %189, %191 : vector<1x2xf32>
    %cst_99 = arith.constant 0.000000e+00 : f32
    %193 = vector.broadcast %cst_99 : f32 to vector<1x2xf32>
    %194 = arith.subf %193, %192 : vector<1x2xf32>
    %195 = math.exp %194 : vector<1x2xf32>
    %cst_100 = arith.constant 1.000000e+00 : f32
    %196 = vector.broadcast %cst_100 : f32 to vector<1x2xf32>
    %197 = arith.addf %196, %195 : vector<1x2xf32>
    %198 = tpu.reciprocal %197 {approx = true} : vector<1x2xf32> -> vector<1x2xf32>
    %c0_101 = arith.constant 0 : index
    %c0_102 = arith.constant 0 : index
    %199 = vector.load %arg9[%c0_101, %c0_102] : memref<1x2xf32, #tpu.memory_space<vmem>>, vector<1x2xf32>
    tpu.vector_store %arg9[%c0_101, %c0_102], %198 {strides = array<i32>} : memref<1x2xf32, #tpu.memory_space<vmem>>, vector<1x2xf32>,
    return
  }
}

</mosaic_0001>

<bundles_post_ra>
// kernel: relation_network_forward.1
= control target key start
LH: loop header
LB: loop body
LE: loop exit
PB: predicated region body
PF: predicated region fallthrough
CT: control target
= control target key end

     0   :  { %s2861_s13 = smov 8   ;;  %vm131_vm0 = vcmask 523264   ;;  %s2862_s28 = smov 9   ;;  %s3375_s0 = inlined_call_operand.vmem [shape: f32[64,128], index: 0, kind: input, shape index: {}]   ;;  %s3376_s1 = inlined_call_operand.vmem [shape: bf16[288,64], index: 1, kind: input, shape index: {}]   ;;  %s3377_s2 = inlined_call_operand.vmem [shape: bf16[288,32], index: 2, kind: input, shape index: {}]   ;;  %s3378_s3 = inlined_call_operand.vmem [shape: bf16[32,32], index: 3, kind: input, shape index: {}]   ;;  %s3379_s4 = inlined_call_operand.vmem [shape: f32[9,128], index: 4, kind: input, shape index: {}]   ;;  %s3380_s5 = inlined_call_operand.vmem [shape: f32[9,128], index: 5, kind: input, shape index: {}]   ;;  %s3381_s6 = inlined_call_operand.vmem [shape: bf16[128,8], index: 6, kind: input, shape index: {}]   ;;  %s3382_s7 = inlined_call_operand.vmem [shape: f32[32,2], index: 7, kind: input, shape index: {}]   ;;  %s3383_s8 = inlined_call_operand.vmem [shape: f32[8,3], index: 8, kind: input, shape index: {}]   ;;  %s3384_s9 = inlined_call_operand.hbm [shape: f32[1,2], index: 9, kind: output, shape index: {}]  }
   0x1   :  { %v2938_v0 = vld [vmem:[%s3375_s0 + $0x10] sm:$0xff]  ;;  %v2943_v1 = vld [vmem:[%s3375_s0] sm:$0xff]  ;;  %v2950_v2 = vld [vmem:[%s3375_s0 + $0x18] sm:$0xff] }
   0x2   :  { %88 = vrot.lane.b32.xlu1 %v2938_v0, %s2861_s13  ;;  %84 = vrot.lane.b32.xlu0 %v2943_v1, %s2861_s13  ;;  %v2955_v3 = vld [vmem:[%s3375_s0 + $0x8] sm:$0xff]  ;;  %v2967_v5 = vld [vmem:[%s3375_s0 + $0x20] sm:$0xff] }
   0x3   :  { %v2960_v4 = vld [vmem:[%s3375_s0 + $0x28] sm:$0xff]  ;;  %v2972_v6 = vld [vmem:[%s3375_s0 + $0x38] sm:$0xff]  ;;  %v2979_v7 = vld [vmem:[%s3375_s0 + $0x30] sm:$0xff]  ;;  %s2863_s0 = smov 7  }
   0x4   :  { %v2789_v8 = vld [vmem:[%s3376_s1 + $0x10] sm:$0xff]  }
   0x5   :  { %2450 = vmatprep.mubr.msk.bf16.mxu0 %vm131_vm0, %v2789_v8 }
   0x6   :  { %90 = vrot.lane.b32.xlu1 %v2950_v2, %s2861_s13  ;;  %86 = vrot.lane.b32.xlu0 %v2955_v3, %s2861_s13 }
   0xa   :  { %94 = vrot.lane.b32.xlu1 %v2960_v4, %s2861_s13  ;;  %92 = vrot.lane.b32.xlu0 %v2967_v5, %s2861_s13 }
   0xe   :  { %98 = vrot.lane.b32.xlu1 %v2972_v6, %s2861_s13  ;;  %96 = vrot.lane.b32.xlu0 %v2979_v7, %s2861_s13 }
  0x12   :  { %49 = vrot.lane.b32.xlu1 %v2955_v3, %s2862_s28  ;;  %47 = vrot.lane.b32.xlu0 %v2943_v1, %s2862_s28 }
  0x16   :  { %53 = vrot.lane.b32.xlu1 %v2950_v2, %s2862_s28  ;;  %51 = vrot.lane.b32.xlu0 %v2938_v0, %s2862_s28 }
  0x1a   :  { %57 = vrot.lane.b32.xlu1 %v2960_v4, %s2862_s28  ;;  %55 = vrot.lane.b32.xlu0 %v2967_v5, %s2862_s28 }
  0x1e   :  { %61 = vrot.lane.b32.xlu1 %v2972_v6, %s2862_s28  ;;  %59 = vrot.lane.b32.xlu0 %v2979_v7, %s2862_s28 }
  0x22   :  { %254 = vrot.lane.b32.xlu1 %v2955_v3, %s2863_s0  ;;  %252 = vrot.lane.b32.xlu0 %v2943_v1, %s2863_s0 }
  0x26   :  { %258 = vrot.lane.b32.xlu1 %v2950_v2, %s2863_s0  ;;  %256 = vrot.lane.b32.xlu0 %v2938_v0, %s2863_s0 }
  0x27   :  { %14 = vsyncpa [#allocation3], 0  ;;  %s2864_s29 = smov 1   ;;  %s2865_s30 = smov 127   ;;  %v2231_v11 = vld [vmem:[%s3379_s4 + $0x1] ss:$0 sm:$0xff] }
  0x28   :  { %s2866_s10 = smov 121   ;;  %s2867_s11 = smov 120   ;;  %v2230_v29 = vld [vmem:[%s3379_s4] ss:$0 sm:$0xff]  ;;  %v2790_v40 = vld [vmem:[%s3376_s1 + $0x18] sm:$0xff]   ;;  %v3075_v47 = vld [vmem:[%s3382_s7 + $0x8] sm:$0xff] }
  0x29   :  { %s2868_s12 = smov 119   ;;  %v2791_v41 = vld [vmem:[%s3376_s1] sm:$0xff]   ;;  %v2869_v50 = vmov 0   ;;  %v3090_v55 = vld [vmem:[%s3382_s7 + $0x10] sm:$0xff]  ;;  %v3098_v57 = vld [vmem:[%s3382_s7 + $0x18] sm:$0xff]  ;;  %vm1073_vm1 = vcmask 261120  }
  0x2a   :  { %262 = vrot.lane.b32.xlu1 %v2960_v4, %s2863_s0  ;;  %260 = vrot.lane.b32.xlu0 %v2967_v5, %s2863_s0  ;;  %v3081_v48 = vld [vmem:[%s3382_s7] sm:$0xff]  ;;  %s2870_s28 = smov 16   ;;  %s2875_s7 = smov 114   ;;  %vm2880_vm2 = vmmov 0   ;;  %vm2196_vm3 = vcmask 15360   ;;  %vm2214_vm4 = vcmask 8192  }
  0x2b   :  { %2763 = vset.pattern.permute.xlu1 %v2869_v50  ;;  %2762 = vset.pattern.permute.xlu0 %v2869_v50  ;;  %v2240_v56 = vld [vmem:[%s3379_s4 + $0x2] ss:$0 sm:$0xff]  ;;  %s2877_s13 = smov 110  }
  0x2e   :  { %266 = vrot.lane.b32.xlu1 %v2972_v6, %s2863_s0  ;;  %264 = vrot.lane.b32.xlu0 %v2979_v7, %s2863_s0  ;;  %s2872_s0 = smov 14  }
  0x32   :  { %360 = vrot.lane.b32.xlu1 %v2955_v3, %s2864_s29  ;;  %358 = vrot.lane.b32.xlu0 %v2943_v1, %s2864_s29 }
  0x36   :  { %364 = vrot.lane.b32.xlu1 %v2950_v2, %s2864_s29  ;;  %362 = vrot.lane.b32.xlu0 %v2938_v0, %s2864_s29 }
  0x3a   :  { %368 = vrot.lane.b32.xlu1 %v2960_v4, %s2864_s29  ;;  %366 = vrot.lane.b32.xlu0 %v2967_v5, %s2864_s29 }
  0x3e   :  { %372 = vrot.lane.b32.xlu1 %v2972_v6, %s2864_s29  ;;  %370 = vrot.lane.b32.xlu0 %v2979_v7, %s2864_s29  ;;  %s2873_s29 = smov 2  }
  0x42   :  { %543 = vrot.lane.b32.xlu1 %v2955_v3, %s2865_s30  ;;  %541 = vrot.lane.b32.xlu0 %v2943_v1, %s2865_s30 }
  0x46   :  { %547 = vrot.lane.b32.xlu1 %v2950_v2, %s2865_s30  ;;  %545 = vrot.lane.b32.xlu0 %v2938_v0, %s2865_s30 }
  0x4a   :  { %551 = vrot.lane.b32.xlu1 %v2960_v4, %s2865_s30  ;;  %549 = vrot.lane.b32.xlu0 %v2967_v5, %s2865_s30 }
  0x4e   :  { %555 = vrot.lane.b32.xlu1 %v2972_v6, %s2865_s30  ;;  %553 = vrot.lane.b32.xlu0 %v2979_v7, %s2865_s30 }
  0x52   :  { %649 = vrot.lane.b32.xlu1 %v2955_v3, %s2866_s10  ;;  %647 = vrot.lane.b32.xlu0 %v2943_v1, %s2866_s10 }
  0x56   :  { %653 = vrot.lane.b32.xlu1 %v2950_v2, %s2866_s10  ;;  %651 = vrot.lane.b32.xlu0 %v2938_v0, %s2866_s10 }
  0x5a   :  { %657 = vrot.lane.b32.xlu1 %v2960_v4, %s2866_s10  ;;  %655 = vrot.lane.b32.xlu0 %v2967_v5, %s2866_s10 }
  0x5e   :  { %661 = vrot.lane.b32.xlu1 %v2972_v6, %s2866_s10  ;;  %659 = vrot.lane.b32.xlu0 %v2979_v7, %s2866_s10  ;;  %s2874_s10 = smov 126  }
  0x62   :  { %755 = vrot.lane.b32.xlu1 %v2955_v3, %s2867_s11  ;;  %753 = vrot.lane.b32.xlu0 %v2943_v1, %s2867_s11 }
  0x66   :  { %759 = vrot.lane.b32.xlu1 %v2950_v2, %s2867_s11  ;;  %757 = vrot.lane.b32.xlu0 %v2938_v0, %s2867_s11 }
  0x6a   :  { %763 = vrot.lane.b32.xlu1 %v2960_v4, %s2867_s11  ;;  %761 = vrot.lane.b32.xlu0 %v2967_v5, %s2867_s11 }
  0x6e   :  { %767 = vrot.lane.b32.xlu1 %v2972_v6, %s2867_s11  ;;  %765 = vrot.lane.b32.xlu0 %v2979_v7, %s2867_s11 }
  0x72   :  { %861 = vrot.lane.b32.xlu1 %v2955_v3, %s2868_s12  ;;  %859 = vrot.lane.b32.xlu0 %v2943_v1, %s2868_s12 }
  0x74   :  { %v89_v9 = vpop.permute.xlu1 %88  ;;  %v85_v10 = vpop.permute.xlu0 %84 }
  0x75   :  { %v107_v14 = vmul.f32 %v2231_v11, %v89_v9  ;;  %v105_v15 = vmul.f32 %v2231_v11, %v85_v10 }
  0x76   :  { %865 = vrot.lane.b32.xlu1 %v2950_v2, %s2868_s12  ;;  %863 = vrot.lane.b32.xlu0 %v2938_v0, %s2868_s12 }
  0x78   :  { %v91_v12 = vpop.permute.xlu1 %90  ;;  %v87_v13 = vpop.permute.xlu0 %86 }
  0x79   :  { %v108_v16 = vmul.f32 %v2231_v11, %v91_v12  ;;  %v106_v17 = vmul.f32 %v2231_v11, %v87_v13  ;;  %v2792_v12 = vld [vmem:[%s3376_s1 + $0x8] sm:$0xff]   ;;  %v2793_v13 = vld [vmem:[%s3376_s1 + $0x20] sm:$0xff]  }
  0x7a   :  { %869 = vrot.lane.b32.xlu1 %v2960_v4, %s2868_s12  ;;  %867 = vrot.lane.b32.xlu0 %v2967_v5, %s2868_s12 }
  0x7b   :  { %v117_v18 = vpack.c.bf16 %v106_v17, %v105_v15  ;;  %v118_v21 = vpack.c.bf16 %v108_v16, %v107_v14 }
  0x7c   :  { %v95_v19 = vpop.permute.xlu1 %94  ;;  %v93_v20 = vpop.permute.xlu0 %92 }
  0x7d   :  { %2442 = vmatprep.subr.bf16.mxu0 %v117_v18  ;;  %v110_v22 = vmul.f32 %v2231_v11, %v95_v19  ;;  %v109_v23 = vmul.f32 %v2231_v11, %v93_v20 }
  0x7e   :  { %2443 = vmatpush3.bf16.msra.mxu0 %v117_v18  ;;  %873 = vrot.lane.b32.xlu1 %v2972_v6, %s2868_s12 }
  0x7f   :  { %2444 = vmatprep.subr.bf16.mxu0 %v118_v21  ;;  %v119_v24 = vpack.c.bf16 %v110_v22, %v109_v23  ;;  %871 = vrot.lane.b32.xlu0 %v2979_v7, %s2868_s12  ;;  %s2876_s12 = smov 112  }
  0x80   :  { %v99_v25 = vpop.permute.xlu1 %98  ;;  %v97_v26 = vpop.permute.xlu0 %96 }
  0x81   :  { %v112_v27 = vmul.f32 %v2231_v11, %v99_v25  ;;  %v111_v28 = vmul.f32 %v2231_v11, %v97_v26 }
  0x82   :  { %2445 = vmatpush3.bf16.msra.mxu0 %v118_v21  ;;  %972 = vperm.xlu1 %2763, %v3075_v47  }
  0x83   :  { %v120_v30 = vpack.c.bf16 %v112_v27, %v111_v28  ;;  %2446 = vmatprep.subr.bf16.mxu0 %v119_v24  ;;  %967 = vperm.xlu0 %2762, %v3081_v48  }
  0x84   :  { %v50_v31 = vpop.permute.xlu1 %49  ;;  %v48_v32 = vpop.permute.xlu0 %47 }
  0x85   :  { %v69_v33 = vmul.f32 %v2230_v29, %v50_v31  ;;  %v68_v34 = vmul.f32 %v2230_v29, %v48_v32 }
  0x86   :  { %2447 = vmatpush3.bf16.msra.mxu0 %v119_v24  ;;  %977 = vperm.xlu1 %2763, %v3090_v55   ;;  %v2245_v24 = vld [vmem:[%s3379_s4 + $0x3] ss:$0 sm:$0xff] }
  0x87   :  { %v80_v35 = vpack.c.bf16 %v69_v33, %v68_v34  ;;  %2448 = vmatprep.subr.bf16.mxu0 %v120_v30  ;;  %982 = vperm.xlu0 %2762, %v3098_v57  }
  0x88   :  { %v54_v36 = vpop.permute.xlu1 %53  ;;  %v52_v37 = vpop.permute.xlu0 %51 }
  0x89   :  { %v71_v38 = vmul.f32 %v2230_v29, %v54_v36  ;;  %v70_v39 = vmul.f32 %v2230_v29, %v52_v37  ;;  %v2795_v36 = vld [vmem:[%s3376_s1 + $0x30] sm:$0xff]  }
  0x8a   :  { %2449 = vmatpush3.bf16.msra.mxu0 %v120_v30 }
  0x8b   :  { %v81_v42 = vpack.c.bf16 %v71_v38, %v70_v39  ;;  %2454 = vmatprep.subr.bf16.mxu0 %v80_v35 }
  0x8c   :  { %v58_v43 = vpop.permute.xlu1 %57  ;;  %v56_v44 = vpop.permute.xlu0 %55 }
  0x8d   :  { %2451 = vmatmul.mubr.msk.bf16.vlgmr.msra.gmra.mrb[0].mxu0 %vm131_vm0, %v2790_v40  ;;  %v73_v45 = vmul.f32 %v2230_v29, %v58_v43  ;;  %v72_v46 = vmul.f32 %v2230_v29, %v56_v44 }
  0x8e   :  { %2455 = vmatpush3.bf16.msra.mxu0 %v80_v35  ;;  %2462 = vmatprep.mubr.msk.bf16.mxu0 %vm131_vm0, %v2791_v41  ;;  %v2794_v35 = vld [vmem:[%s3376_s1 + $0x28] sm:$0xff]  }
  0x8f   :  { %v82_v49 = vpack.c.bf16 %v73_v45, %v72_v46  ;;  %2456 = vmatprep.subr.bf16.mxu0 %v81_v42 }
  0x90   :  { %v62_v51 = vpop.permute.xlu1 %61  ;;  %v60_v52 = vpop.permute.xlu0 %59 }
  0x91   :  { %v75_v53 = vmul.f32 %v2230_v29, %v62_v51  ;;  %v74_v54 = vmul.f32 %v2230_v29, %v60_v52 }
  0x92   :  { %2457 = vmatpush3.bf16.msra.mxu0 %v81_v42 }
  0x93   :  { %v83_v58 = vpack.c.bf16 %v75_v53, %v74_v54  ;;  %2458 = vmatprep.subr.bf16.mxu0 %v82_v49  ;;  %v468_v53 = vpack.c.bf16 %v2955_v3, %v2943_v1  ;;  %v470_v1 = vpack.c.bf16 %v2960_v4, %v2967_v5  ;;  %v2254_v3 = vld [vmem:[%s3379_s4 + $0x5] ss:$0 sm:$0xff] }
  0x94   :  { %v255_v59 = vpop.permute.xlu1 %254  ;;  %v253_v60 = vpop.permute.xlu0 %252 }
  0x95   :  { %v274_v61 = vmul.f32 %v2240_v56, %v255_v59  ;;  %v273_v62 = vmul.f32 %v2240_v56, %v253_v60  ;;  %v2797_v59 = vld [vmem:[%s3376_s1 + $0x40] sm:$0xff]   ;;  %v469_v60 = vpack.c.bf16 %v2950_v2, %v2938_v0 }
  0x96   :  { %2459 = vmatpush3.bf16.msra.mxu0 %v82_v49 }
  0x97   :  { %v285_v63 = vpack.c.bf16 %v274_v61, %v273_v62  ;;  %2460 = vmatprep.subr.bf16.mxu0 %v83_v58 }
  0x98   :  { %v259_v8 = vpop.permute.xlu1 %258  ;;  %v257_v9 = vpop.permute.xlu0 %256 }
  0x99   :  { %v276_v10 = vmul.f32 %v2240_v56, %v259_v8  ;;  %v275_v11 = vmul.f32 %v2240_v56, %v257_v9  ;;  %v471_v9 = vpack.c.bf16 %v2972_v6, %v2979_v7 }
  0x9a   :  { %2461 = vmatpush3.bf16.msra.mxu0 %v83_v58  ;;  %v2796_v58 = vld [vmem:[%s3376_s1 + $0x38] sm:$0xff]  }
  0x9b   :  { %v286_v14 = vpack.c.bf16 %v276_v10, %v275_v11  ;;  %2466 = vmatprep.subr.bf16.mxu0 %v285_v63 }
  0x9c   :  { %v263_v15 = vpop.permute.xlu1 %262  ;;  %v261_v16 = vpop.permute.xlu0 %260 }
  0x9d   :  { %2463 = vmatmul.mubr.msk.bf16.vlgmr.msra.gmra.mrb[0].mxu0 %vm131_vm0, %v2792_v12  ;;  %v278_v17 = vmul.f32 %v2240_v56, %v263_v15  ;;  %v277_v18 = vmul.f32 %v2240_v56, %v261_v16  ;;  %v2798_v15 = vld [vmem:[%s3376_s1 + $0x48] sm:$0xff]   ;;  %v2799_v16 = vld [vmem:[%s3376_s1 + $0x50] sm:$0xff]  }
  0x9e   :  { %2467 = vmatpush3.bf16.msra.mxu0 %v285_v63  ;;  %2474 = vmatprep.mubr.msk.bf16.mxu0 %vm131_vm0, %v2793_v13 }
  0x9f   :  { %v287_v19 = vpack.c.bf16 %v278_v17, %v277_v18  ;;  %2468 = vmatprep.subr.bf16.mxu0 %v286_v14 }
  0xa0   :  { %v267_v20 = vpop.permute.xlu1 %266  ;;  %v265_v21 = vpop.permute.xlu0 %264 }
  0xa1   :  { %v280_v22 = vmul.f32 %v2240_v56, %v267_v20  ;;  %v279_v23 = vmul.f32 %v2240_v56, %v265_v21 }
  0xa2   :  { %2469 = vmatpush3.bf16.msra.mxu0 %v286_v14 }
  0xa3   :  { %v288_v25 = vpack.c.bf16 %v280_v22, %v279_v23  ;;  %2470 = vmatprep.subr.bf16.mxu0 %v287_v19  ;;  %v2259_v23 = vld [vmem:[%s3379_s4 + $0x6] ss:$0 sm:$0xff] }
  0xa4   :  { %v361_v26 = vpop.permute.xlu1 %360  ;;  %v359_v27 = vpop.permute.xlu0 %358 }
  0xa5   :  { %v380_v28 = vmul.f32 %v2245_v24, %v361_v26  ;;  %v379_v29 = vmul.f32 %v2245_v24, %v359_v27 }
  0xa6   :  { %2471 = vmatpush3.bf16.msra.mxu0 %v287_v19 }
  0xa7   :  { %v391_v30 = vpack.c.bf16 %v380_v28, %v379_v29  ;;  %2472 = vmatprep.subr.bf16.mxu0 %v288_v25 }
  0xa8   :  { %v365_v31 = vpop.permute.xlu1 %364  ;;  %v363_v32 = vpop.permute.xlu0 %362 }
  0xa9   :  { %v382_v33 = vmul.f32 %v2245_v24, %v365_v31  ;;  %v381_v34 = vmul.f32 %v2245_v24, %v363_v32 }
  0xaa   :  { %2473 = vmatpush3.bf16.msra.mxu0 %v288_v25 }
  0xab   :  { %v392_v37 = vpack.c.bf16 %v382_v33, %v381_v34  ;;  %2478 = vmatprep.subr.bf16.mxu0 %v391_v30 }
  0xac   :  { %v369_v38 = vpop.permute.xlu1 %368  ;;  %v367_v39 = vpop.permute.xlu0 %366 }
  0xad   :  { %2475 = vmatmul.mubr.msk.bf16.vlgmr.msra.gmra.mrb[0].mxu0 %vm131_vm0, %v2794_v35  ;;  %v384_v40 = vmul.f32 %v2245_v24, %v369_v38  ;;  %v383_v41 = vmul.f32 %v2245_v24, %v367_v39 }
  0xae   :  { %2479 = vmatpush3.bf16.msra.mxu0 %v391_v30  ;;  %2486 = vmatprep.mubr.msk.bf16.mxu0 %vm131_vm0, %v2795_v36  ;;  %v2800_v36 = vld [vmem:[%s3376_s1 + $0x58] sm:$0xff]  }
  0xaf   :  { %v393_v42 = vpack.c.bf16 %v384_v40, %v383_v41  ;;  %2480 = vmatprep.subr.bf16.mxu0 %v392_v37 }
  0xb0   :  { %v373_v43 = vpop.permute.xlu1 %372  ;;  %v371_v44 = vpop.permute.xlu0 %370 }
  0xb1   :  { %v386_v45 = vmul.f32 %v2245_v24, %v373_v43  ;;  %v385_v46 = vmul.f32 %v2245_v24, %v371_v44 }
  0xb2   :  { %2481 = vmatpush3.bf16.msra.mxu0 %v392_v37  ;;  %v2801_v37 = vld [vmem:[%s3376_s1 + $0x60] sm:$0xff]  }
  0xb3   :  { %v394_v49 = vpack.c.bf16 %v386_v45, %v385_v46  ;;  %2482 = vmatprep.subr.bf16.mxu0 %v393_v42  ;;  %v2264_v46 = vld [vmem:[%s3379_s4 + $0x7] ss:$0 sm:$0xff] }
  0xb4   :  { %v544_v51 = vpop.permute.xlu1 %543  ;;  %v542_v52 = vpop.permute.xlu0 %541 }
  0xb5   :  { %v563_v0 = vmul.f32 %v2254_v3, %v544_v51  ;;  %v562_v2 = vmul.f32 %v2254_v3, %v542_v52 }
  0xb6   :  { %2483 = vmatpush3.bf16.msra.mxu0 %v393_v42 }
  0xb7   :  { %2484 = vmatprep.subr.bf16.mxu0 %v394_v49  ;;  %v574_v12 = vpack.c.bf16 %v563_v0, %v562_v2 }
  0xb8   :  { %v548_v54 = vpop.permute.xlu1 %547  ;;  %v546_v56 = vpop.permute.xlu0 %545 }
  0xb9   :  { %v565_v13 = vmul.f32 %v2254_v3, %v548_v54  ;;  %v564_v4 = vmul.f32 %v2254_v3, %v546_v56 }
  0xba   :  { %2485 = vmatpush3.bf16.msra.mxu0 %v394_v49 }
  0xbb   :  { %2490 = vmatprep.subr.bf16.mxu0 %v468_v53  ;;  %v575_v17 = vpack.c.bf16 %v565_v13, %v564_v4 }
  0xbc   :  { %v552_v61 = vpop.permute.xlu1 %551  ;;  %v550_v62 = vpop.permute.xlu0 %549 }
  0xbd   :  { %2487 = vmatmul.mubr.msk.bf16.vlgmr.msra.gmra.mrb[0].mxu0 %vm131_vm0, %v2796_v58  ;;  %v567_v6 = vmul.f32 %v2254_v3, %v552_v61  ;;  %v566_v7 = vmul.f32 %v2254_v3, %v550_v62 }
  0xbe   :  { %2491 = vmatpush3.bf16.msra.mxu0 %v468_v53  ;;  %2498 = vmatprep.mubr.msk.bf16.mxu0 %vm131_vm0, %v2797_v59 }
  0xbf   :  { %2492 = vmatprep.subr.bf16.mxu0 %v469_v60  ;;  %v576_v20 = vpack.c.bf16 %v567_v6, %v566_v7  ;;  %v2804_v7 = vld [vmem:[%s3376_s1 + $0x78] sm:$0xff]  }
  0xc0   :  { %v556_v63 = vpop.permute.xlu1 %555  ;;  %v554_v8 = vpop.permute.xlu0 %553 }
  0xc1   :  { %v569_v21 = vmul.f32 %v2254_v3, %v556_v63  ;;  %v568_v22 = vmul.f32 %v2254_v3, %v554_v8 }
  0xc2   :  { %2493 = vmatpush3.bf16.msra.mxu0 %v469_v60  ;;  %v2802_v60 = vld [vmem:[%s3376_s1 + $0x68] sm:$0xff]  }
  0xc3   :  { %2494 = vmatprep.subr.bf16.mxu0 %v470_v1  ;;  %v577_v26 = vpack.c.bf16 %v569_v21, %v568_v22 }
  0xc4   :  { %v650_v10 = vpop.permute.xlu1 %649  ;;  %v648_v11 = vpop.permute.xlu0 %647 }
  0xc5   :  { %v669_v27 = vmul.f32 %v2259_v23, %v650_v10  ;;  %v668_v28 = vmul.f32 %v2259_v23, %v648_v11  ;;  %v2269_v10 = vld [vmem:[%s3379_s4 + $0x8] ss:$0 sm:$0xff] }
  0xc6   :  { %2495 = vmatpush3.bf16.msra.mxu0 %v470_v1  ;;  %v2803_v1 = vld [vmem:[%s3376_s1 + $0x70] sm:$0xff]  }
  0xc7   :  { %2496 = vmatprep.subr.bf16.mxu0 %v471_v9  ;;  %v680_v31 = vpack.c.bf16 %v669_v27, %v668_v28  ;;  %v2806_v28 = vld [vmem:[%s3376_s1 + $0x88] sm:$0xff]  }
  0xc8   :  { %v654_v5 = vpop.permute.xlu1 %653  ;;  %v652_v14 = vpop.permute.xlu0 %651 }
  0xc9   :  { %v671_v32 = vmul.f32 %v2259_v23, %v654_v5  ;;  %v670_v33 = vmul.f32 %v2259_v23, %v652_v14 }
  0xca   :  { %2497 = vmatpush3.bf16.msra.mxu0 %v471_v9 }
  0xcb   :  { %2502 = vmatprep.subr.bf16.mxu0 %v574_v12  ;;  %v681_v38 = vpack.c.bf16 %v671_v32, %v670_v33 }
  0xcc   :  { %v658_v18 = vpop.permute.xlu1 %657  ;;  %v656_v19 = vpop.permute.xlu0 %655 }
  0xcd   :  { %2499 = vmatmul.mubr.msk.bf16.vlgmr.msra.gmra.mrb[0].mxu0 %vm131_vm0, %v2798_v15  ;;  %v673_v39 = vmul.f32 %v2259_v23, %v658_v18  ;;  %v672_v40 = vmul.f32 %v2259_v23, %v656_v19  ;;  %v2805_v18 = vld [vmem:[%s3376_s1 + $0x80] sm:$0xff]  }
  0xce   :  { %2503 = vmatpush3.bf16.msra.mxu0 %v574_v12  ;;  %2510 = vmatprep.mubr.msk.bf16.mxu0 %vm131_vm0, %v2799_v16 }
  0xcf   :  { %2504 = vmatprep.subr.bf16.mxu0 %v575_v17  ;;  %v682_v43 = vpack.c.bf16 %v673_v39, %v672_v40 }
  0xd0   :  { %v662_v24 = vpop.permute.xlu1 %661  ;;  %v660_v25 = vpop.permute.xlu0 %659 }
  0xd1   :  { %v675_v44 = vmul.f32 %v2259_v23, %v662_v24  ;;  %v674_v45 = vmul.f32 %v2259_v23, %v660_v25 }
  0xd2   :  { %2505 = vmatpush3.bf16.msra.mxu0 %v575_v17 }
  0xd3   :  { %2506 = vmatprep.subr.bf16.mxu0 %v576_v20  ;;  %v683_v49 = vpack.c.bf16 %v675_v44, %v674_v45 }
  0xd4   :  { %v756_v29 = vpop.permute.xlu1 %755  ;;  %v754_v30 = vpop.permute.xlu0 %753 }
  0xd5   :  { %v775_v51 = vmul.f32 %v2264_v46, %v756_v29  ;;  %v774_v52 = vmul.f32 %v2264_v46, %v754_v30 }
  0xd6   :  { %2507 = vmatpush3.bf16.msra.mxu0 %v576_v20 }
  0xd7   :  { %2508 = vmatprep.subr.bf16.mxu0 %v577_v26  ;;  %v786_v56 = vpack.c.bf16 %v775_v51, %v774_v52 }
  0xd8   :  { %v760_v34 = vpop.permute.xlu1 %759  ;;  %v758_v35 = vpop.permute.xlu0 %757 }
  0xd9   :  { %v777_v58 = vmul.f32 %v2264_v46, %v760_v34  ;;  %v776_v59 = vmul.f32 %v2264_v46, %v758_v35 }
  0xda   :  { %2509 = vmatpush3.bf16.msra.mxu0 %v577_v26 }
  0xdb   :  { %2514 = vmatprep.subr.bf16.mxu0 %v680_v31  ;;  %v787_v3 = vpack.c.bf16 %v777_v58, %v776_v59 }
  0xdc   :  { %v764_v41 = vpop.permute.xlu1 %763  ;;  %v762_v42 = vpop.permute.xlu0 %761 }
  0xdd   :  { %2511 = vmatmul.mubr.msk.bf16.vlgmr.msra.gmra.mrb[0].mxu0 %vm131_vm0, %v2800_v36  ;;  %v779_v63 = vmul.f32 %v2264_v46, %v764_v41  ;;  %v778_v8 = vmul.f32 %v2264_v46, %v762_v42 }
  0xde   :  { %2515 = vmatpush3.bf16.msra.mxu0 %v680_v31  ;;  %2522 = vmatprep.mubr.msk.bf16.mxu0 %vm131_vm0, %v2801_v37 }
  0xdf   :  { %2516 = vmatprep.subr.bf16.mxu0 %v681_v38  ;;  %v788_v0 = vpack.c.bf16 %v779_v63, %v778_v8 }
  0xe0   :  { %v768_v53 = vpop.permute.xlu1 %767  ;;  %v766_v54 = vpop.permute.xlu0 %765 }
  0xe1   :  { %v781_v2 = vmul.f32 %v2264_v46, %v768_v53  ;;  %v780_v9 = vmul.f32 %v2264_v46, %v766_v54 }
  0xe2   :  { %2517 = vmatpush3.bf16.msra.mxu0 %v681_v38 }
  0xe3   :  { %2518 = vmatprep.subr.bf16.mxu0 %v682_v43  ;;  %v789_v13 = vpack.c.bf16 %v781_v2, %v780_v9  ;;  %v2878_v9 = vmov 1  }
  0xe4   :  { %v862_v61 = vpop.permute.xlu1 %861  ;;  %v860_v62 = vpop.permute.xlu0 %859  ;;  %2764 = vset.pattern.permute.xlu1 %v2878_v9  ;;  %2765 = vset.pattern.permute.xlu0 %v2878_v9  ;;  %v2816_v9 = vld [vmem:[%s3377_s2 + $0x48] sm:$0xff]  }
  0xe5   :  { %v881_v4 = vmul.f32 %v2269_v10, %v862_v61  ;;  %v880_v5 = vmul.f32 %v2269_v10, %v860_v62 }
  0xe6   :  { %2519 = vmatpush3.bf16.msra.mxu0 %v682_v43 }
  0xe7   :  { %2520 = vmatprep.subr.bf16.mxu0 %v683_v49  ;;  %v892_v16 = vpack.c.bf16 %v881_v4, %v880_v5 }
  0xe8   :  { %v866_v11 = vpop.permute.xlu1 %865  ;;  %v864_v12 = vpop.permute.xlu0 %863 }
  0xe9   :  { %v883_v17 = vmul.f32 %v2269_v10, %v866_v11  ;;  %v882_v6 = vmul.f32 %v2269_v10, %v864_v12 }
  0xea   :  { %2521 = vmatpush3.bf16.msra.mxu0 %v683_v49 }
  0xeb   :  { %2526 = vmatprep.subr.bf16.mxu0 %v786_v56  ;;  %v893_v19 = vpack.c.bf16 %v883_v17, %v882_v6 }
  0xec   :  { %v870_v14 = vpop.permute.xlu1 %869  ;;  %v868_v15 = vpop.permute.xlu0 %867 }
  0xed   :  { %2523 = vmatmul.mubr.msk.bf16.vlgmr.msra.gmra.mrb[0].mxu0 %vm131_vm0, %v2802_v60  ;;  %v885_v20 = vmul.f32 %v2269_v10, %v870_v14  ;;  %v884_v21 = vmul.f32 %v2269_v10, %v868_v15  ;;  %v2807_v60 = vld [vmem:[%s3377_s2 + $0x10] sm:$0xff]  }
  0xee   :  { %2527 = vmatpush3.bf16.msra.mxu0 %v786_v56  ;;  %2534 = vmatprep.mubr.msk.bf16.mxu0 %vm131_vm0, %v2803_v1 }
  0xef   :  { %2528 = vmatprep.subr.bf16.mxu0 %v787_v3  ;;  %v894_v24 = vpack.c.bf16 %v885_v20, %v884_v21  ;;  %2554 = vmatprep.mubr.msk.bf16.mxu1 %vm1073_vm1, %v2807_v60 }
  0xf0   :  { %v874_v22 = vpop.permute.xlu1 %873 }
  0xf1   :  { %v872_v23 = vpop.permute.xlu0 %871  ;;  %v887_v25 = vmul.f32 %v2269_v10, %v874_v22 }
  0xf2   :  { %2529 = vmatpush3.bf16.msra.mxu0 %v787_v3  ;;  %v886_v26 = vmul.f32 %v2269_v10, %v872_v23  ;;  %v2275_v10 = vld [vmem:[%s3380_s5 + $0x1] ss:$0 sm:$0xff] }
  0xf3   :  { %2530 = vmatprep.subr.bf16.mxu0 %v788_v0 }
  0xf4   :  { %v895_v27 = vpack.c.bf16 %v887_v25, %v886_v26 }
  0xf6   :  { %2531 = vmatpush3.bf16.msra.mxu0 %v788_v0 }
  0xf7   :  { %2532 = vmatprep.subr.bf16.mxu0 %v789_v13 }
  0xfa   :  { %2533 = vmatpush3.bf16.msra.mxu0 %v789_v13 }
  0xfb   :  { %2538 = vmatprep.subr.bf16.mxu0 %v892_v16 }
  0xfd   :  { %2535 = vmatmul.mubr.msk.bf16.vlgmr.msra.gmra.mrb[0].mxu0 %vm131_vm0, %v2804_v7  ;;  %v2808_v7 = vld [vmem:[%s3377_s2 + $0x18] sm:$0xff]  }
  0xfe   :  { %2539 = vmatpush3.bf16.msra.mxu0 %v892_v16  ;;  %2546 = vmatprep.mubr.msk.bf16.mxu0 %vm131_vm0, %v2805_v18 }
  0xff   :  { %2540 = vmatprep.subr.bf16.mxu0 %v893_v19 }
 0x101   :  { %v973_v29 = vpop.permute.xlu1 %972 }
 0x102   :  { %2541 = vmatpush3.bf16.msra.mxu0 %v893_v19  ;;  %v968_v30 = vpop.permute.xlu0 %967  ;;  %v2809_v19 = vld [vmem:[%s3377_s2] sm:$0xff]  }
 0x103   :  { %2542 = vmatprep.subr.bf16.mxu0 %v894_v24 }
 0x105   :  { %v978_v32 = vpop.permute.xlu1 %977 }
 0x106   :  { %2543 = vmatpush3.bf16.msra.mxu0 %v894_v24  ;;  %v983_v36 = vpop.permute.xlu0 %982  ;;  %v2284_v24 = vld [vmem:[%s3380_s5 + $0x2] ss:$0 sm:$0xff] }
 0x107   :  { %2544 = vmatprep.subr.bf16.mxu0 %v895_v27 }
 0x10a   :  { %2545 = vmatpush3.bf16.msra.mxu0 %v895_v27 }
 0x10d   :  { %2547 = vmatmul.mubr.msk.bf16.vlgmr.msra.gmra.mrb[0].mxu0 %vm131_vm0, %v2806_v28 }
 0x1e0   :  { %v2548_v31 = vpop.f32.mrb[0].mxu0 }
 0x1e1   :  { %v946_v33 = vpop.f32.mrb[1].mxu0  ;;  %v987_v38 = vadd.f32 %v2548_v31, %v978_v32 }
 0x1e2   :  { %v985_v34 = vadd.f32 %v968_v30, %v946_v33  ;;  %v2549_v35 = vpop.f32.mrb[2].mxu0 }
 0x1e3   :  { %v949_v37 = vpop.f32.mrb[3].mxu0  ;;  %v988_v41 = vadd.f32 %v2549_v35, %v983_v36  ;;  %v991_v43 = vmax.f32 %v987_v38, 0.0  ;;  %v2810_v35 = vld [vmem:[%s3377_s2 + $0x8] sm:$0xff]   ;;  %v2289_v36 = vld [vmem:[%s3380_s5 + $0x3] ss:$0 sm:$0xff] }
 0x1e4   :  { %v989_v39 = vmax.f32 %v985_v34, 0.0  ;;  %v986_v40 = vadd.f32 %v973_v29, %v949_v37  ;;  %v2811_v38 = vld [vmem:[%s3377_s2 + $0x20] sm:$0xff]  }
 0x1e5   :  { %v992_v44 = vmax.f32 %v988_v41, 0.0 }
 0x1e6   :  { %v990_v42 = vmax.f32 %v986_v40, 0.0  ;;  %993 = vrot.lane.b32.xlu1 %v989_v39, %s2865_s30 }
 0x1e8   :  { %995 = vrot.lane.b32.xlu0 %v990_v42, %s2865_s30 }
 0x1ea   :  { %997 = vrot.lane.b32.xlu1 %v991_v43, %s2865_s30 }
 0x1ec   :  { %999 = vrot.lane.b32.xlu0 %v992_v44, %s2865_s30 }
 0x258   :  { %v994_v45 = vpop.permute.xlu1 %993 }
 0x259   :  { %v1001_v46 = vmax.f32 %v989_v39, %v994_v45 }
 0x25a   :  { %v996_v49 = vpop.permute.xlu0 %995 }
 0x25b   :  { %v1002_v51 = vmax.f32 %v990_v42, %v996_v49  ;;  %1005 = vrot.lane.b32.xlu1 %v1001_v46, %s2867_s11  ;;  %v2812_v49 = vld [vmem:[%s3377_s2 + $0x28] sm:$0xff]  }
 0x25c   :  { %v998_v52 = vpop.permute.xlu1 %997 }
 0x25d   :  { %v1003_v53 = vmax.f32 %v991_v43, %v998_v52  ;;  %1007 = vrot.lane.b32.xlu0 %v1002_v51, %s2867_s11 }
 0x25e   :  { %v1000_v54 = vpop.permute.xlu0 %999 }
 0x25f   :  { %v1004_v56 = vmax.f32 %v992_v44, %v1000_v54  ;;  %1009 = vrot.lane.b32.xlu1 %v1003_v53, %s2867_s11  ;;  %v2814_v54 = vld [vmem:[%s3377_s2 + $0x38] sm:$0xff]  }
 0x261   :  { %1011 = vrot.lane.b32.xlu0 %v1004_v56, %s2867_s11  ;;  %s2871_s11 = smov 18  }
 0x2cd   :  { %v1006_v58 = vpop.permute.xlu1 %1005 }
 0x2ce   :  { %v1013_v59 = vmax.f32 %v1001_v46, %v1006_v58  ;;  %v2815_v58 = vld [vmem:[%s3377_s2 + $0x40] sm:$0xff]  }
 0x2cf   :  { %v1008_v61 = vpop.permute.xlu0 %1007 }
 0x2d0   :  { %v1014_v62 = vmax.f32 %v1002_v51, %v1008_v61  ;;  %1040 = vrot.lane.b32.xlu1 %v1013_v59, %s2870_s28  ;;  %v2813_v51 = vld [vmem:[%s3377_s2 + $0x30] sm:$0xff]  }
 0x2d1   :  { %v1010_v1 = vpop.permute.xlu1 %1009 }
 0x2d2   :  { %v1015_v3 = vmax.f32 %v1003_v53, %v1010_v1  ;;  %1042 = vrot.lane.b32.xlu0 %v1014_v62, %s2870_s28  ;;  %v3197_v63 = vpack.c.bf16 %v1014_v62, %v1013_v59 }
 0x2d3   :  { %v1012_v8 = vpop.permute.xlu0 %1011 }
 0x2d4   :  { %v1016_v0 = vmax.f32 %v1004_v56, %v1012_v8  ;;  %1044 = vrot.lane.b32.xlu1 %v1015_v3, %s2870_s28 }
 0x2d6   :  { %1046 = vrot.lane.b32.xlu0 %v1016_v0, %s2870_s28  ;;  %v3199_v2 = vpack.c.bf16 %v1016_v0, %v1015_v3 }
 0x2d8   :  { %1017 = vrot.lane.b32.xlu1 %v1013_v59, %s2871_s11 }
 0x2da   :  { %1019 = vrot.lane.b32.xlu0 %v1014_v62, %s2871_s11 }
 0x2dc   :  { %1021 = vrot.lane.b32.xlu1 %v1015_v3, %s2871_s11 }
 0x2de   :  { %1023 = vrot.lane.b32.xlu0 %v1016_v0, %s2871_s11 }
 0x2e0   :  { %1194 = vrot.lane.b32.xlu1 %v1013_v59, %s2872_s0 }
 0x2e2   :  { %1196 = vrot.lane.b32.xlu0 %v1014_v62, %s2872_s0 }
 0x2e4   :  { %1198 = vrot.lane.b32.xlu1 %v1015_v3, %s2872_s0 }
 0x2e6   :  { %1200 = vrot.lane.b32.xlu0 %v1016_v0, %s2872_s0 }
 0x2e8   :  { %1286 = vrot.lane.b32.xlu1 %v1013_v59, %s2873_s29 }
 0x2ea   :  { %1288 = vrot.lane.b32.xlu0 %v1014_v62, %s2873_s29 }
 0x2ec   :  { %1290 = vrot.lane.b32.xlu1 %v1015_v3, %s2873_s29 }
 0x2ee   :  { %1292 = vrot.lane.b32.xlu0 %v1016_v0, %s2873_s29 }
 0x2f0   :  { %1453 = vrot.lane.b32.xlu1 %v1013_v59, %s2874_s10 }
 0x2f2   :  { %1455 = vrot.lane.b32.xlu0 %v1014_v62, %s2874_s10 }
 0x2f4   :  { %1457 = vrot.lane.b32.xlu1 %v1015_v3, %s2874_s10 }
 0x2f6   :  { %1459 = vrot.lane.b32.xlu0 %v1016_v0, %s2874_s10 }
 0x2f8   :  { %1545 = vrot.lane.b32.xlu1 %v1013_v59, %s2875_s7 }
 0x2fa   :  { %1547 = vrot.lane.b32.xlu0 %v1014_v62, %s2875_s7 }
 0x2fc   :  { %1549 = vrot.lane.b32.xlu1 %v1015_v3, %s2875_s7 }
 0x2fe   :  { %1551 = vrot.lane.b32.xlu0 %v1016_v0, %s2875_s7 }
 0x300   :  { %1637 = vrot.lane.b32.xlu1 %v1013_v59, %s2876_s12 }
 0x302   :  { %1639 = vrot.lane.b32.xlu0 %v1014_v62, %s2876_s12 }
 0x304   :  { %1641 = vrot.lane.b32.xlu1 %v1015_v3, %s2876_s12 }
 0x306   :  { %1643 = vrot.lane.b32.xlu0 %v1016_v0, %s2876_s12 }
 0x308   :  { %1729 = vrot.lane.b32.xlu1 %v1013_v59, %s2877_s13  ;;  %v2298_v59 = vld [vmem:[%s3380_s5 + $0x5] ss:$0 sm:$0xff] }
 0x30a   :  { %1731 = vrot.lane.b32.xlu0 %v1014_v62, %s2877_s13 }
 0x30c   :  { %1733 = vrot.lane.b32.xlu1 %v1015_v3, %s2877_s13 }
 0x30e   :  { %1735 = vrot.lane.b32.xlu0 %v1016_v0, %s2877_s13 }
 0x310   :  { %1822 = vperm.xlu1 %2764, %v3081_v48  }
 0x312   :  { %1826 = vperm.xlu0 %2765, %v3075_v47   ;;  %v2274_v47 = vld [vmem:[%s3380_s5] ss:$0 sm:$0xff] }
 0x314   :  { %1830 = vperm.xlu1 %2764, %v3090_v55  }
 0x316   :  { %2786 = vset.pattern.permute.xlu0 %v2869_v50 }
 0x318   :  { %1834 = vperm.xlu1 %2764, %v3098_v57  }
 0x342   :  { %v1041_v11 = vpop.permute.xlu1 %1040 }
 0x343   :  { %v1053_v13 = vmul.f32 %v2275_v10, %v1041_v11 }
 0x344   :  { %v1043_v12 = vpop.permute.xlu0 %1042 }
 0x345   :  { %v1054_v4 = vmul.f32 %v2275_v10, %v1043_v12  ;;  %v2303_v12 = vld [vmem:[%s3380_s5 + $0x6] ss:$0 sm:$0xff] }
 0x346   :  { %v1045_v5 = vpop.permute.xlu1 %1044 }
 0x347   :  { %v1061_v14 = vpack.c.bf16 %v1054_v4, %v1053_v13  ;;  %v1055_v48 = vmul.f32 %v2275_v10, %v1045_v5 }
 0x348   :  { %v1047_v15 = vpop.permute.xlu0 %1046 }
 0x349   :  { %v1056_v16 = vmul.f32 %v2275_v10, %v1047_v15  ;;  %2550 = vmatprep.subr.bf16.mxu1 %v1061_v14 }
 0x34a   :  { %v1018_v50 = vpop.permute.xlu1 %1017  ;;  %2551 = vmatpush3.bf16.msra.mxu1 %v1061_v14 }
 0x34b   :  { %v1062_v55 = vpack.c.bf16 %v1056_v16, %v1055_v48  ;;  %v1030_v17 = vmul.f32 %v2274_v47, %v1018_v50 }
 0x34c   :  { %v1020_v57 = vpop.permute.xlu0 %1019 }
 0x34d   :  { %v1031_v6 = vmul.f32 %v2274_v47, %v1020_v57  ;;  %2552 = vmatprep.subr.bf16.mxu1 %v1062_v55 }
 0x34e   :  { %v1022_v18 = vpop.permute.xlu1 %1021  ;;  %2553 = vmatpush3.bf16.msra.mxu1 %v1062_v55  ;;  %v2819_v55 = vld [vmem:[%s3377_s2 + $0x60] sm:$0xff]  }
 0x34f   :  { %v1038_v20 = vpack.c.bf16 %v1031_v6, %v1030_v17  ;;  %v1032_v22 = vmul.f32 %v2274_v47, %v1022_v18  ;;  %v2308_v17 = vld [vmem:[%s3380_s5 + $0x7] ss:$0 sm:$0xff] }
 0x350   :  { %v1024_v21 = vpop.permute.xlu0 %1023 }
 0x351   :  { %v1033_v23 = vmul.f32 %v2274_v47, %v1024_v21  ;;  %2555 = vmatmul.mubr.msk.bf16.vlgmr.msra.gmra.mrb[0].mxu1 %vm1073_vm1, %v2808_v7  ;;  %2558 = vmatprep.subr.bf16.mxu1 %v1038_v20  ;;  %v2818_v47 = vld [vmem:[%s3377_s2 + $0x58] sm:$0xff]  }
 0x352   :  { %v1195_v25 = vpop.permute.xlu1 %1194  ;;  %2559 = vmatpush3.bf16.msra.mxu1 %v1038_v20  ;;  %2562 = vmatprep.mubr.msk.bf16.mxu1 %vm1073_vm1, %v2809_v19 }
 0x353   :  { %v1039_v26 = vpack.c.bf16 %v1033_v23, %v1032_v22  ;;  %v1207_v28 = vmul.f32 %v2284_v24, %v1195_v25 }
 0x354   :  { %v1197_v27 = vpop.permute.xlu0 %1196 }
 0x355   :  { %v1208_v29 = vmul.f32 %v2284_v24, %v1197_v27  ;;  %2560 = vmatprep.subr.bf16.mxu1 %v1039_v26 }
 0x356   :  { %v1199_v30 = vpop.permute.xlu1 %1198  ;;  %2561 = vmatpush3.bf16.msra.mxu1 %v1039_v26  ;;  %v2821_v26 = vld [vmem:[%s3377_s2 + $0x70] sm:$0xff]  }
 0x357   :  { %v1215_v31 = vpack.c.bf16 %v1208_v29, %v1207_v28  ;;  %v1209_v33 = vmul.f32 %v2284_v24, %v1199_v30  ;;  %v2313_v28 = vld [vmem:[%s3380_s5 + $0x8] ss:$0 sm:$0xff] }
 0x358   :  { %v1201_v32 = vpop.permute.xlu0 %1200 }
 0x359   :  { %v1210_v34 = vmul.f32 %v2284_v24, %v1201_v32  ;;  %2566 = vmatprep.subr.bf16.mxu1 %v1215_v31  ;;  %v2820_v24 = vld [vmem:[%s3377_s2 + $0x68] sm:$0xff]  }
 0x35a   :  { %v1287_v37 = vpop.permute.xlu1 %1286 }
 0x35b   :  { %v1216_v39 = vpack.c.bf16 %v1210_v34, %v1209_v33  ;;  %v1299_v41 = vmul.f32 %v2289_v36, %v1287_v37  ;;  %v2822_v37 = vld [vmem:[%s3377_s2 + $0x78] sm:$0xff]  }
 0x35c   :  { %v1289_v40 = vpop.permute.xlu0 %1288 }
 0x35d   :  { %v1300_v42 = vmul.f32 %v2289_v36, %v1289_v40  ;;  %2563 = vmatmul.mubr.msk.bf16.vlgmr.msra.gmra.mrb[0].mxu1 %vm1073_vm1, %v2810_v35 }
 0x35e   :  { %2567 = vmatpush3.bf16.msra.mxu1 %v1215_v31  ;;  %2570 = vmatprep.mubr.msk.bf16.mxu1 %vm1073_vm1, %v2811_v38  ;;  %v1291_v45 = vpop.permute.xlu1 %1290  ;;  %v2823_v38 = vld [vmem:[%s3377_s2 + $0x80] sm:$0xff]  }
 0x35f   :  { %v1307_v43 = vpack.c.bf16 %v1300_v42, %v1299_v41  ;;  %2568 = vmatprep.subr.bf16.mxu1 %v1216_v39  ;;  %v1301_v52 = vmul.f32 %v2289_v36, %v1291_v45  ;;  %v2824_v41 = vld [vmem:[%s3377_s2 + $0x88] sm:$0xff]  }
 0x360   :  { %v1293_v44 = vpop.permute.xlu0 %1292 }
 0x361   :  { %v1302_v46 = vmul.f32 %v2289_v36, %v1293_v44 }
 0x362   :  { %2569 = vmatpush3.bf16.msra.mxu1 %v1216_v39  ;;  %v1454_v60 = vpop.permute.xlu1 %1453 }
 0x363   :  { %2574 = vmatprep.subr.bf16.mxu1 %v1307_v43  ;;  %v1308_v53 = vpack.c.bf16 %v1302_v46, %v1301_v52  ;;  %v1466_v62 = vmul.f32 %v2298_v59, %v1454_v60 }
 0x364   :  { %v1456_v56 = vpop.permute.xlu0 %1455 }
 0x365   :  { %v1467_v61 = vmul.f32 %v2298_v59, %v1456_v56 }
 0x366   :  { %v1458_v8 = vpop.permute.xlu1 %1457 }
 0x367   :  { %v1474_v3 = vpack.c.bf16 %v1467_v61, %v1466_v62  ;;  %v1468_v11 = vmul.f32 %v2298_v59, %v1458_v8 }
 0x368   :  { %v1460_v1 = vpop.permute.xlu0 %1459 }
 0x369   :  { %2571 = vmatmul.mubr.msk.bf16.vlgmr.msra.gmra.mrb[0].mxu1 %vm1073_vm1, %v2812_v49  ;;  %v1469_v0 = vmul.f32 %v2298_v59, %v1460_v1  ;;  %v2826_v59 = vld [vmem:[%s3381_s6 + $0x8] sm:$0xff]  }
 0x36a   :  { %2575 = vmatpush3.bf16.msra.mxu1 %v1307_v43  ;;  %2578 = vmatprep.mubr.msk.bf16.mxu1 %vm1073_vm1, %v2813_v51  ;;  %v1546_v13 = vpop.permute.xlu1 %1545 }
 0x36b   :  { %2576 = vmatprep.subr.bf16.mxu1 %v1308_v53  ;;  %v1475_v4 = vpack.c.bf16 %v1469_v0, %v1468_v11  ;;  %v2827_v0 = vld [vmem:[%s3381_s6 + $0x10] sm:$0xff]   ;;  %v2830_v11 = vld [vmem:[%s3381_s6 + $0x28] sm:$0xff]  }
 0x36c   :  { %v1548_v10 = vpop.permute.xlu0 %1547 }
 0x36d   :  { %v1559_v5 = vmul.f32 %v2303_v12, %v1548_v10  ;;  %v2828_v10 = vld [vmem:[%s3381_s6 + $0x18] sm:$0xff]  }
 0x36e   :  { %2577 = vmatpush3.bf16.msra.mxu1 %v1308_v53  ;;  %v1550_v48 = vpop.permute.xlu1 %1549 }
 0x36f   :  { %2582 = vmatprep.subr.bf16.mxu1 %v3197_v63  ;;  %v1560_v57 = vmul.f32 %v2303_v12, %v1550_v48 }
 0x370   :  { %v1552_v14 = vpop.permute.xlu0 %1551 }
 0x371   :  { %v1561_v16 = vmul.f32 %v2303_v12, %v1552_v14 }
 0x372   :  { %v1638_v6 = vpop.permute.xlu1 %1637 }
 0x373   :  { %v1567_v7 = vpack.c.bf16 %v1561_v16, %v1560_v57  ;;  %v1650_v19 = vmul.f32 %v2308_v17, %v1638_v6 }
 0x374   :  { %v1640_v50 = vpop.permute.xlu0 %1639 }
 0x375   :  { %2579 = vmatmul.mubr.msk.bf16.vlgmr.msra.gmra.mrb[0].mxu1 %vm1073_vm1, %v2814_v54  ;;  %v1651_v18 = vmul.f32 %v2308_v17, %v1640_v50 }
 0x376   :  { %2583 = vmatpush3.bf16.msra.mxu1 %v3197_v63  ;;  %2586 = vmatprep.mubr.msk.bf16.mxu1 %vm1073_vm1, %v2815_v58  ;;  %v2817_v63 = vld [vmem:[%s3377_s2 + $0x50] sm:$0xff]   ;;  %v1642_v22 = vpop.permute.xlu1 %1641  ;;  %v2825_v58 = vld [vmem:[%s3381_s6] sm:$0xff]  }
 0x377   :  { %2584 = vmatprep.subr.bf16.mxu1 %v3199_v2  ;;  %v1658_v21 = vpack.c.bf16 %v1651_v18, %v1650_v19  ;;  %v1652_v27 = vmul.f32 %v2308_v17, %v1642_v22 }
 0x378   :  { %v1644_v20 = vpop.permute.xlu0 %1643 }
 0x379   :  { %v1653_v23 = vmul.f32 %v2308_v17, %v1644_v20 }
 0x37a   :  { %2585 = vmatpush3.bf16.msra.mxu1 %v3199_v2  ;;  %v1558_v2 = vmul.f32 %v2303_v12, %v1546_v13  ;;  %v1730_v29 = vpop.permute.xlu1 %1729  ;;  %v2831_v12 = vld [vmem:[%s3381_s6 + $0x30] sm:$0xff]   ;;  %v2832_v13 = vld [vmem:[%s3381_s6 + $0x38] sm:$0xff]  }
 0x37b   :  { %2590 = vmatprep.subr.bf16.mxu1 %v1474_v3  ;;  %v1659_v30 = vpack.c.bf16 %v1653_v23, %v1652_v27  ;;  %v1742_v32 = vmul.f32 %v2313_v28, %v1730_v29 }
 0x37c   :  { %v1566_v15 = vpack.c.bf16 %v1559_v5, %v1558_v2  ;;  %v1732_v25 = vpop.permute.xlu0 %1731 }
 0x37d   :  { %v1743_v31 = vmul.f32 %v2313_v28, %v1732_v25 }
 0x37e   :  { %v1734_v35 = vpop.permute.xlu1 %1733 }
 0x37f   :  { %v1750_v33 = vpack.c.bf16 %v1743_v31, %v1742_v32  ;;  %v1744_v39 = vmul.f32 %v2313_v28, %v1734_v35  ;;  %v38_v35 = vld [vmem:[%s3383_s8] sm:$0xff] }
 0x380   :  { %v1736_v34 = vpop.permute.xlu0 %1735 }
 0x381   :  { %2587 = vmatmul.mubr.msk.bf16.vlgmr.msra.gmra.mrb[0].mxu1 %vm1073_vm1, %v2816_v9  ;;  %v1745_v36 = vmul.f32 %v2313_v28, %v1736_v34  ;;  %v2879_v28 = vmov 0.0  }
 0x382   :  { %2591 = vmatpush3.bf16.msra.mxu1 %v1474_v3  ;;  %2594 = vmatprep.mubr.msk.bf16.mxu1 %vm1073_vm1, %v2817_v63  ;;  %v2829_v63 = vld [vmem:[%s3381_s6 + $0x20] sm:$0xff]   ;;  %s2881_s6 = smov 124  }
 0x383   :  { %2592 = vmatprep.subr.bf16.mxu1 %v1475_v4  ;;  %v1751_v40 = vpack.c.bf16 %v1745_v36, %v1744_v39  ;;  %v2883_v36 = vmov 2   ;;  %v1987_v39 = vld [vmem:[%s3378_s3 + $0x4] sm:$0xf] }
 0x386   :  { %2593 = vmatpush3.bf16.msra.mxu1 %v1475_v4 }
 0x387   :  { %2598 = vmatprep.subr.bf16.mxu1 %v1566_v15 }
 0x38d   :  { %2595 = vmatmul.mubr.msk.bf16.vlgmr.msra.gmra.mrb[0].mxu1 %vm1073_vm1, %v2818_v47 }
 0x38e   :  { %2599 = vmatpush3.bf16.msra.mxu1 %v1566_v15  ;;  %2602 = vmatprep.mubr.msk.bf16.mxu1 %vm1073_vm1, %v2819_v55 }
 0x38f   :  { %2600 = vmatprep.subr.bf16.mxu1 %v1567_v7  ;;  %v1823_v42 = vpop.permute.xlu1 %1822 }
 0x391   :  { %v1827_v49 = vpop.permute.xlu0 %1826 }
 0x392   :  { %2601 = vmatpush3.bf16.msra.mxu1 %v1567_v7 }
 0x393   :  { %2606 = vmatprep.subr.bf16.mxu1 %v1658_v21  ;;  %v1831_v43 = vpop.permute.xlu1 %1830 }
 0x397   :  { %v1835_v51 = vpop.permute.xlu1 %1834 }
 0x399   :  { %2603 = vmatmul.mubr.msk.bf16.vlgmr.msra.gmra.mrb[0].mxu1 %vm1073_vm1, %v2820_v24 }
 0x39a   :  { %2607 = vmatpush3.bf16.msra.mxu1 %v1658_v21  ;;  %2610 = vmatprep.mubr.msk.bf16.mxu1 %vm1073_vm1, %v2821_v26 }
 0x39b   :  { %2608 = vmatprep.subr.bf16.mxu1 %v1659_v30 }
 0x39e   :  { %2609 = vmatpush3.bf16.msra.mxu1 %v1659_v30 }
 0x39f   :  { %2614 = vmatprep.subr.bf16.mxu1 %v1750_v33 }
 0x3a5   :  { %2611 = vmatmul.mubr.msk.bf16.vlgmr.msra.gmra.mrb[0].mxu1 %vm1073_vm1, %v2822_v37 }
 0x3a6   :  { %2615 = vmatpush3.bf16.msra.mxu1 %v1750_v33  ;;  %2618 = vmatprep.mubr.msk.bf16.mxu1 %vm1073_vm1, %v2823_v38 }
 0x3a7   :  { %2616 = vmatprep.subr.bf16.mxu1 %v1751_v40 }
 0x3aa   :  { %2617 = vmatpush3.bf16.msra.mxu1 %v1751_v40  ;;  %v1986_v40 = vld [vmem:[%s3378_s3] sm:$0xf] }
 0x3ab   :  { %2622 = vmatprep.subr.bf16.mxu1 %v2825_v58 }
 0x3b1   :  { %2619 = vmatmul.mubr.msk.bf16.vlgmr.msra.gmra.mrb[0].mxu1 %vm1073_vm1, %v2824_v41 }
 0x3b2   :  { %2623 = vmatpush3.bf16.msra.mxu1 %v2825_v58 }
 0x3b3   :  { %2624 = vmatprep.subr.bf16.mxu1 %v2826_v59 }
 0x3b6   :  { %2625 = vmatpush3.bf16.msra.mxu1 %v2826_v59 }
 0x3b7   :  { %2626 = vmatprep.subr.bf16.mxu1 %v2827_v0 }
 0x3ba   :  { %2627 = vmatpush3.bf16.msra.mxu1 %v2827_v0 }
 0x3bb   :  { %2628 = vmatprep.subr.bf16.mxu1 %v2828_v10 }
 0x3be   :  { %2629 = vmatpush3.bf16.msra.mxu1 %v2828_v10 }
 0x3bf   :  { %2630 = vmatprep.subr.bf16.mxu1 %v2829_v63 }
 0x3c2   :  { %2631 = vmatpush3.bf16.msra.mxu1 %v2829_v63 }
 0x3c3   :  { %2632 = vmatprep.subr.bf16.mxu1 %v2830_v11 }
 0x3c6   :  { %2633 = vmatpush3.bf16.msra.mxu1 %v2830_v11 }
 0x3c7   :  { %2634 = vmatprep.subr.bf16.mxu1 %v2831_v12 }
 0x3ca   :  { %2635 = vmatpush3.bf16.msra.mxu1 %v2831_v12 }
 0x3cb   :  { %2636 = vmatprep.subr.bf16.mxu1 %v2832_v13 }
 0x3ce   :  { %2637 = vmatpush3.bf16.msra.mxu1 %v2832_v13 }
 0x3cf   :  { %2642 = vmatprep.subr.bf16.mxu1 %v2879_v28 }
 0x484   :  { %v2620_v44 = vpop.f32.mrb[0].mxu1 }
 0x485   :  { %v1839_v45 = vadd.f32 %v2620_v44, %v1831_v43  ;;  %v1802_v46 = vpop.f32.mrb[1].mxu1  ;;  %v2082_v43 = vld [vmem:[%s3378_s3 + $0x8] sm:$0xf] }
 0x486   :  { %v1837_v52 = vadd.f32 %v1823_v42, %v1802_v46  ;;  %v2621_v53 = vpop.f32.mrb[2].mxu1  ;;  %v2133_v46 = vld [vmem:[%s3378_s3 + $0xc] sm:$0xf]  ;;  %s2884_s3 = smov [#allocation2]  }
 0x487   :  { %v1840_v54 = vadd.f32 %v2621_v53, %v1835_v51  ;;  %v1805_v56 = vpop.f32.mrb[3].mxu1  ;;  %v1843_v61 = vmax.f32 %v1839_v45, 0.0  ;;  %s2222_s16 = sshll.u32 %s2884_s3, 4  ;;  %s2223_s16 = int_to_ptr.vmem [resolvable:$true] %s2222_s16 }
 0x488   :  { %v1838_v60 = vadd.f32 %v1827_v49, %v1805_v56  ;;  %v1841_v1 = vmax.f32 %v1837_v52, 0.0  ;;  %s2837_s17 = scalar_lea.vmem %s2223_s16, 16  ;;  %s2841_s18 = scalar_lea.vmem %s2223_s16, 32 }
 0x489   :  { %v1844_v62 = vmax.f32 %v1840_v54, 0.0  ;;  %p2838_p0 = scmp.ne.s32.totalorder %s2223_s16, %s2837_s17  ;;  %p2842_p1 = scmp.lt.s32.totalorder %s2223_s16, %s2223_s16 }
 0x48a   :  { %v1842_v3 = vmax.f32 %v1838_v60, 0.0  ;;  %p2843_p2 = scmp.lt.s32.totalorder %s2841_s18, %s2837_s17 }
 0x48b   :  { %v2771_v8 = vpack.i.bf16 %v1844_v62, %v1843_v61 }
 0x48c   :  { %v2766_v9 = vpack.i.bf16 %v1842_v3, %v1841_v1  ;;  %p2844_p3 = por %p2843_p2, %p2842_p1 }
 0x48d   :  { %2772 = vrot.lane.b32.xlu1 %v2771_v8, %s2874_s10 }
 0x48e   :  { %2767 = vrot.lane.b32.xlu0 %v2766_v9, %s2874_s10  ;;  %p2845_p4 = pnand %p2844_p3, %p2838_p0 }
 0x4ff   :  { %v2773_v4 = vpop.permute.xlu1 %2772 }
 0x500   :  { %v2775_v5 = vunpack.i.h.bf16 %v2773_v4  ;;  %v2774_v2 = vunpack.i.l.bf16 %v2773_v4  ;;  %v2768_v14 = vpop.permute.xlu0 %2767 }
 0x501   :  { %v2770_v15 = vunpack.i.h.bf16 %v2768_v14  ;;  %v2769_v48 = vunpack.i.l.bf16 %v2768_v14 }
 0x502   :  { %v1856_v16 = vmax.f32 %v1844_v62, %v2775_v5  ;;  %v1855_v47 = vmax.f32 %v1843_v61, %v2774_v2 }
 0x503   :  { %v1854_v50 = vmax.f32 %v1842_v3, %v2770_v15  ;;  %v1853_v55 = vmax.f32 %v1841_v1, %v2769_v48 }
 0x504   :  { %v2781_v57 = vpack.i.bf16 %v1856_v16, %v1855_v47 }
 0x505   :  { %v2776_v17 = vpack.i.bf16 %v1854_v50, %v1853_v55 }
 0x506   :  { %2782 = vrot.lane.b32.xlu1 %v2781_v57, %s2876_s12 }
 0x507   :  { %2777 = vrot.lane.b32.xlu0 %v2776_v17, %s2876_s12  ;;  %s2882_s12 = smov 122  }
 0x578   :  { %v2783_v6 = vpop.permute.xlu1 %2782 }
 0x579   :  { %v2785_v7 = vunpack.i.h.bf16 %v2783_v6  ;;  %v2784_v18 = vunpack.i.l.bf16 %v2783_v6  ;;  %v2778_v19 = vpop.permute.xlu0 %2777 }
 0x57a   :  { %v2780_v20 = vunpack.i.h.bf16 %v2778_v19  ;;  %v2779_v21 = vunpack.i.l.bf16 %v2778_v19 }
 0x57b   :  { %v1868_v22 = vmax.f32 %v1856_v16, %v2785_v7  ;;  %v1867_v23 = vmax.f32 %v1855_v47, %v2784_v18 }
 0x57c   :  { %v1866_v24 = vmax.f32 %v1854_v50, %v2780_v20  ;;  %v1865_v25 = vmax.f32 %v1853_v55, %v2779_v21 }
 0x57d   :  { %v1870_v27 = vpack.c.bf16 %v1868_v22, %v1867_v23 }
 0x57e   :  { %v1869_v26 = vpack.c.bf16 %v1866_v24, %v1865_v25 }
 0x580   :  { %2638 = vmatprep.mubr.bf16.mxu1 %v1869_v26 }
 0x581   :  { %2639 = vmatmul.mubr.bf16.vlgmr.msra.gmra.mrb[4].mxu1 %v1870_v27 }
 0x582   :  { %2646 = vmatprep.mubr.msk.bf16.mxu1 %vm2880_vm2, %v2879_v28 }
 0x654   :  { %v2640_v29 = vpop.f32.mrb[4].mxu1 }
 0x655   :  { %v1969_v30 = vpop.f32.mrb[5].mxu1 }
 0x656   :  { %v2641_v31 = vpop.f32.mrb[6].mxu1 }
 0x657   :  { %v1985_v32 = vpack.c.bf16 %v2641_v31, %v2640_v29  ;;  %v1972_v33 = vpop.f32.mrb[7].mxu1 }
 0x658   :  { %v1984_v34 = vpack.c.bf16 %v1972_v33, %v1969_v30 }
 0x659   :  { %1992 = vrot.lane.b32.xlu1 %v1985_v32, %s2874_s10 }
 0x65a   :  { %1990 = vrot.lane.b32.xlu0 %v1984_v34, %s2874_s10 }
 0x65d   :  { %2085 = vrot.lane.b32.xlu1 %v1985_v32, %s2881_s6 }
 0x65e   :  { %2083 = vrot.lane.b32.xlu0 %v1984_v34, %s2881_s6 }
 0x661   :  { %2136 = vrot.lane.b32.xlu1 %v1985_v32, %s2882_s12 }
 0x662   :  { %2134 = vrot.lane.b32.xlu0 %v1984_v34, %s2882_s12 }
 0x665   :  { %2192 = vperm.xlu1 %2764, %v38_v35  }
 0x666   :  { %2186 = vperm.xlu0 %2786, %v38_v35  }
 0x669   :  { %2787 = vset.pattern.permute.xlu1 %v2883_v36 }
 0x66a   :  { %2788 = vset.pattern.permute.xlu0 %v2883_v36  ;;  %2205 = vperm.xlu1 %2787, %v38_v35  }
 0x6cb   :  { %v1993_v38 = vpop.permute.xlu1 %1992 }
 0x6cc   :  { %v1991_v37 = vpop.permute.xlu0 %1990 }
 0x6cd   :  { %2643 = vmatpush3.bf16.msra.mxu1 %v1991_v37 }
 0x6ce   :  { %2644 = vmatprep.subr.bf16.mxu1 %v2879_v28 }
 0x6cf   :  { %v2086_v42 = vpop.permute.xlu1 %2085 }
 0x6d0   :  { %v2084_v41 = vpop.permute.xlu0 %2083 }
 0x6d1   :  { %2645 = vmatpush3.bf16.msra.mxu1 %v1993_v38 }
 0x6d2   :  { %2650 = vmatprep.subr.bf16.mxu1 %v2879_v28 }
 0x6d3   :  { %v2137_v45 = vpop.permute.xlu1 %2136 }
 0x6d4   :  { %2647 = vmatmul.mubr.msk.bf16.vlgmr.msra.gmra.mrb[8].mxu1 %vm1073_vm1, %v1987_v39  ;;  %v2135_v44 = vpop.permute.xlu0 %2134 }
 0x6d5   :  { %2651 = vmatpush3.bf16.msra.mxu1 %v1984_v34  ;;  %2654 = vmatprep.mubr.msk.bf16.mxu1 %vm2880_vm2, %v2879_v28 }
 0x6d6   :  { %2652 = vmatprep.subr.bf16.mxu1 %v2879_v28 }
 0x6d9   :  { %2653 = vmatpush3.bf16.msra.mxu1 %v1985_v32 }
 0x6da   :  { %2658 = vmatprep.subr.bf16.mxu1 %v2879_v28 }
 0x6dc   :  { %2655 = vmatmul.mubr.msk.bf16.vlgmr.msra.gmra.mrb[12].mxu1 %vm1073_vm1, %v1986_v40 }
 0x6dd   :  { %2659 = vmatpush3.bf16.msra.mxu1 %v2084_v41  ;;  %2662 = vmatprep.mubr.msk.bf16.mxu1 %vm2880_vm2, %v2879_v28 }
 0x6de   :  { %2660 = vmatprep.subr.bf16.mxu1 %v2879_v28 }
 0x6e1   :  { %2661 = vmatpush3.bf16.msra.mxu1 %v2086_v42 }
 0x6e2   :  { %2666 = vmatprep.subr.bf16.mxu1 %v2879_v28 }
 0x6e4   :  { %2663 = vmatmul.mubr.msk.bf16.vlgmr.msra.gmra.mrb[16].mxu1 %vm1073_vm1, %v2082_v43  ;;  %v2193_v5 = vpop.permute.xlu1 %2192 }
 0x6e5   :  { %2667 = vmatpush3.bf16.msra.mxu1 %v2135_v44  ;;  %2670 = vmatprep.mubr.msk.bf16.mxu1 %vm2880_vm2, %v2879_v28  ;;  %v2187_v9 = vpop.permute.xlu0 %2186 }
 0x6e6   :  { %2668 = vmatprep.subr.bf16.mxu1 %v2879_v28 }
 0x6e9   :  { %2669 = vmatpush3.bf16.msra.mxu1 %v2137_v45  ;;  %v2206_v55 = vpop.permute.xlu1 %2205 }
 0x6ec   :  { %2671 = vmatmul.mubr.msk.bf16.vlgmr.msra.gmra.mrb[20].mxu1 %vm1073_vm1, %v2133_v46 }
 0x7a7   :  { %v2033_v49 = vpop.f32.mrb[8].mxu1 }
 0x7a8   :  { %v2648_v51 = vpop.f32.mrb[9].mxu1 }
 0x7a9   :  { %v2036_v52 = vpop.f32.mrb[10].mxu1 }
 0x7aa   :  { %v2649_v53 = vpop.f32.mrb[11].mxu1 }
 0x7af   :  { %v2076_v54 = vpop.f32.mrb[12].mxu1 }
 0x7b0   :  { %v2077_v56 = vadd.f32 %v2076_v54, %v2033_v49  ;;  %v2656_v58 = vpop.f32.mrb[13].mxu1 }
 0x7b1   :  { %v2079_v59 = vpop.f32.mrb[14].mxu1 }
 0x7b2   :  { %v2657_v60 = vpop.f32.mrb[15].mxu1 }
 0x7b7   :  { %v2126_v61 = vpop.f32.mrb[16].mxu1 }
 0x7b8   :  { %v2132_v62 = vadd.f32 %v2126_v61, %v2077_v56  ;;  %v2664_v1 = vpop.f32.mrb[17].mxu1 }
 0x7b9   :  { %v2129_v3 = vpop.f32.mrb[18].mxu1 }
 0x7ba   :  { %v2665_v8 = vpop.f32.mrb[19].mxu1 }
 0x7bf   :  { %v2177_v0 = vpop.f32.mrb[20].mxu1 }
 0x7c0   :  { %v2183_v10 = vadd.f32 %v2177_v0, %v2132_v62  ;;  %v2672_v63 = vpop.f32.mrb[21].mxu1 }
 0x7c1   :  { %v2180_v11 = vpop.f32.mrb[22].mxu1 }
 0x7c2   :  { %v2189_v12 = vadd.f32 %v2187_v9, %v2183_v10  ;;  %v2673_v13 = vpop.f32.mrb[23].mxu1 }
 0x7c4   :  { %v2190_v4 = vmax.f32 %v2189_v12, 0.0 }
 0x7c6   :  { %v2195_v2 = vmul.f32 %v2193_v5, %v2190_v4 }
 0x7c8   :  { %v2197_v14 = vsel %vm2196_vm3, %v2195_v2, 0.0 }
 0x7c9   :  { %v2198_v15 = vrot.slane %v2197_v14, 4 }
 0x7cb   :  { %v2199_v48 = vadd.f32 %v2198_v15, %v2197_v14 }
 0x7cd   :  { %v2200_v16 = vrot.slane %v2199_v48, 2 }
 0x7cf   :  { %v2201_v47 = vadd.f32 %v2200_v16, %v2199_v48 }
 0x7d1   :  { %v2202_v50 = vrot.slane %v2201_v47, 1 }
 0x7d3   :  { %v2203_v57 = vadd.f32 %v2202_v50, %v2201_v47 }
 0x7d5   :  { %v2208_v17 = vadd.f32 %v2206_v55, %v2203_v57 }
 0x7d7   :  { %v2209_v6 = vsub.f32 0.0, %v2208_v17 }
 0x7d9   :  { %v2210_v7 = vmul.f32 1.442695, %v2209_v6 }
 0x7db   :  { %2833 = vpow2.f32 %v2210_v7 }
 0x7e5   :  { %v2834_v18 = vpop.eup %2833 }
 0x7e6   :  { %v2212_v19 = vadd.f32 1.0, %v2834_v18 }
 0x7e8   :  { %2835 = vrcp.f32 %v2212_v19 }
 0x7f2   :  { %v2836_v20 = vpop.eup %2835 }
 0x7f3   :  { %2215 = vst.msk [vmem:[#allocation2] sm:$0x1] %vm2214_vm4, %v2836_v20 }
 0x7f4   :  { %2848 = shalt.err (!%p2845_p4)
}
 0x7f5   :  { %s2849_s2 = scalar_lea.hbm %s3384_s9, 16 }
 0x7f6   :  { %p2850_p5 = scmp.ne.s32.totalorder %s3384_s9, %s2849_s2  ;;  %p2853_p6 = scmp.lt.u32.totalorder %s2849_s2, %s3384_s9 }
 0x7f8   :  { %p2855_p7 = pnand %p2853_p6, %p2850_p5 }
 0x7fa   :  { %2858 = shalt.err (!%p2855_p7)
}
 0x7fb   :  { %2225 = dma.vmem_to_hbm [thread:$0]  %s2223_s16, 16, %s3384_s9, [#allocation3]  }
 0x7fc   :  { %2859 = dma.done.wait [#allocation3], 16  }
 0x7fd   :  { %2860 = vsyncadd [#allocation3], 4294967280 }
 0x7fe   :  { %2229 = vsyncpa [#allocation3], 1 }

</bundles_post_ra>
